<compile_context>
chip_gen: v6e
topology: v6e:2x2x1
jax: 0.10.0
libtpu: 0.0.40
codegen_flags: <defaults>
</compile_context>

<pallas_src>
import math
import functools

import jax
import jax.numpy as jnp
from jax.experimental import pallas as pl
from jax.experimental.pallas import tpu as pltpu

VMEM_LIMIT = 48 * 1024 * 1024  # fits v7x (64 MiB) while > 32 MiB default


# ---------------------------------------------------------------- kernels ---

def _fused_mha_ln_kernel(xq_ref, xkv_ref, wq_ref, wk_ref, wv_ref, wo_ref,
                         bq_ref, bk_ref, bv_ref, bo_ref, g_ref, bln_ref,
                         o_ref, *, causal, eps, scale):
    """One batch element: per-head QKV proj + attention + out-proj + residual + LN."""
    xq = xq_ref[0]                       # (Sq, D) f32
    xkv = xkv_ref[0]                     # (Sk, D) f32
    H, _, _ = wq_ref.shape
    Sq, D = xq.shape
    Sk = xkv.shape[0]

    # bf16 operands for the MXU, f32 accumulation everywhere.
    xq_b = jnp.broadcast_to(xq.astype(jnp.bfloat16)[None], (H, Sq, D))
    xkv_b = jnp.broadcast_to(xkv.astype(jnp.bfloat16)[None], (H, Sk, D))

    # Per-head projections, all heads in one batched matmul: (H, S, Dh)
    q = jnp.einsum('hsd,hde->hse', xq_b, wq_ref[...],
                   preferred_element_type=jnp.float32) + bq_ref[...]
    k = jnp.einsum('hsd,hde->hse', xkv_b, wk_ref[...],
                   preferred_element_type=jnp.float32) + bk_ref[...]
    v = jnp.einsum('hsd,hde->hse', xkv_b, wv_ref[...],
                   preferred_element_type=jnp.float32) + bv_ref[...]

    # Scores for all heads, contracting the head dim (no explicit transpose).
    s = jnp.einsum('hqe,hke->hqk', q.astype(jnp.bfloat16),
                   k.astype(jnp.bfloat16),
                   preferred_element_type=jnp.float32) * scale

    if causal:
        row = jax.lax.broadcasted_iota(jnp.int32, (Sq, Sk), 0)
        col = jax.lax.broadcasted_iota(jnp.int32, (Sq, Sk), 1)
        s = jnp.where((col <= row)[None, :, :], s, -1e30)

    # Softmax in f32 (VPU/EUP path; v5e-safe).
    s = s - jnp.max(s, axis=-1, keepdims=True)
    p = jnp.exp(s)
    p = p / jnp.sum(p, axis=-1, keepdims=True)

    o_h = jnp.einsum('hqk,hke->hqe', p.astype(jnp.bfloat16),
                     v.astype(jnp.bfloat16),
                     preferred_element_type=jnp.float32)      # (H, Sq, Dh)

    # Output projection per head, then sum over heads == concat-heads @ Wo.
    proj = jnp.einsum('hqe,hed->hqd', o_h.astype(jnp.bfloat16), wo_ref[...],
                      preferred_element_type=jnp.float32)      # (H, Sq, D)
    y = jnp.sum(proj, axis=0) + bo_ref[...] + xq               # residual (f32)

    # Post-LN epilogue (f32).
    mean = jnp.mean(y, axis=-1, keepdims=True)
    var = jnp.mean((y - mean) ** 2, axis=-1, keepdims=True)
    o_ref[0] = (y - mean) * jax.lax.rsqrt(var + eps) * g_ref[...] + bln_ref[...]


def _fused_ffn_ln_kernel(x_ref, w1_ref, b1_ref, w2_ref, b2_ref,
                         g_ref, bln_ref, o_ref, *, eps):
    """FFN (matmul-ReLU-matmul) + residual + LayerNorm, tiled over M rows."""
    x = x_ref[...]                                             # (TM, D) f32
    h = jnp.dot(x.astype(jnp.bfloat16), w1_ref[...],
                preferred_element_type=jnp.float32) + b1_ref[...]
    h = jnp.maximum(h, 0.0)
    y = jnp.dot(h.astype(jnp.bfloat16), w2_ref[...],
                preferred_element_type=jnp.float32) + b2_ref[...]
    y = y + x                                                  # residual (f32)
    mean = jnp.mean(y, axis=-1, keepdims=True)
    var = jnp.mean((y - mean) ** 2, axis=-1, keepdims=True)
    o_ref[...] = (y - mean) * jax.lax.rsqrt(var + eps) * g_ref[...] + bln_ref[...]


def _linear_logsoftmax_kernel(x_ref, w_ref, b_ref, o_ref):
    logits = jnp.dot(x_ref[...].astype(jnp.bfloat16), w_ref[...],
                     preferred_element_type=jnp.float32) + b_ref[...]
    m = jnp.max(logits, axis=-1, keepdims=True)
    lse = jnp.log(jnp.sum(jnp.exp(logits - m), axis=-1, keepdims=True)) + m
    o_ref[...] = logits - lse


# --------------------------------------------------------------- wrappers ---

def _row_tile(M):
    # Full extent for small M; 256-row tiles otherwise (MXU/HBM friendly,
    # divisible by 8, fits v7x 64 MiB VMEM with resident weights).
    return M if M <= 512 else 256


def fused_mha_ln(x_q, x_kv, attn_p, gamma, beta, num_heads, causal, eps=1e-5):
    B, Sq, D = x_q.shape
    Sk = x_kv.shape[1]
    H = num_heads
    Dh = D // H

    # Split weights per head outside the kernel (free in XLA) so the kernel
    # never has to reshape/slice the minor dimension.
    wq = attn_p["wq"].reshape(D, H, Dh).transpose(1, 0, 2).astype(jnp.bfloat16)
    wk = attn_p["wk"].reshape(D, H, Dh).transpose(1, 0, 2).astype(jnp.bfloat16)
    wv = attn_p["wv"].reshape(D, H, Dh).transpose(1, 0, 2).astype(jnp.bfloat16)
    wo = attn_p["wo"].reshape(H, Dh, D).astype(jnp.bfloat16)
    bq = attn_p["bq"].reshape(H, 1, Dh)
    bk = attn_p["bk"].reshape(H, 1, Dh)
    bv = attn_p["bv"].reshape(H, 1, Dh)
    bo = attn_p["bo"].reshape(1, D)

    kernel = functools.partial(_fused_mha_ln_kernel, causal=causal, eps=eps,
                               scale=1.0 / math.sqrt(Dh))

    return pl.pallas_call(
        kernel,
        out_shape=jax.ShapeDtypeStruct((B, Sq, D), jnp.float32),
        grid=(B,),
        in_specs=[
            pl.BlockSpec((1, Sq, D), lambda b: (b, 0, 0)),      # x_q
            pl.BlockSpec((1, Sk, D), lambda b: (b, 0, 0)),      # x_kv
            pl.BlockSpec((H, D, Dh), lambda b: (0, 0, 0)),      # wq (resident)
            pl.BlockSpec((H, D, Dh), lambda b: (0, 0, 0)),      # wk
            pl.BlockSpec((H, D, Dh), lambda b: (0, 0, 0)),      # wv
            pl.BlockSpec((H, Dh, D), lambda b: (0, 0, 0)),      # wo
            pl.BlockSpec((H, 1, Dh), lambda b: (0, 0, 0)),      # bq
            pl.BlockSpec((H, 1, Dh), lambda b: (0, 0, 0)),      # bk
            pl.BlockSpec((H, 1, Dh), lambda b: (0, 0, 0)),      # bv
            pl.BlockSpec((1, D), lambda b: (0, 0)),             # bo
            pl.BlockSpec((1, D), lambda b: (0, 0)),             # ln gamma
            pl.BlockSpec((1, D), lambda b: (0, 0)),             # ln beta
        ],
        out_specs=pl.BlockSpec((1, Sq, D), lambda b: (b, 0, 0)),
        compiler_params=pltpu.CompilerParams(
            dimension_semantics=("parallel",),
            vmem_limit_bytes=VMEM_LIMIT),
    )(x_q, x_kv, wq, wk, wv, wo, bq, bk, bv, bo,
      gamma.reshape(1, D), beta.reshape(1, D))


def fused_ffn_ln(x, w1, b1, w2, b2, gamma, beta, eps=1e-5):
    B, S, D = x.shape
    M = B * S
    d_ff = w1.shape[1]
    TM = _row_tile(M)

    out = pl.pallas_call(
        functools.partial(_fused_ffn_ln_kernel, eps=eps),
        out_shape=jax.ShapeDtypeStruct((M, D), jnp.float32),
        grid=(pl.cdiv(M, TM),),
        in_specs=[
            pl.BlockSpec((TM, D), lambda i: (i, 0)),            # x rows
            pl.BlockSpec((D, d_ff), lambda i: (0, 0)),          # w1 (resident)
            pl.BlockSpec((1, d_ff), lambda i: (0, 0)),          # b1
            pl.BlockSpec((d_ff, D), lambda i: (0, 0)),          # w2 (resident)
            pl.BlockSpec((1, D), lambda i: (0, 0)),             # b2
            pl.BlockSpec((1, D), lambda i: (0, 0)),             # ln gamma
            pl.BlockSpec((1, D), lambda i: (0, 0)),             # ln beta
        ],
        out_specs=pl.BlockSpec((TM, D), lambda i: (i, 0)),
        compiler_params=pltpu.CompilerParams(
            dimension_semantics=("parallel",),
            vmem_limit_bytes=VMEM_LIMIT),
    )(x.reshape(M, D), w1.astype(jnp.bfloat16), b1.reshape(1, d_ff),
      w2.astype(jnp.bfloat16), b2.reshape(1, D),           # <-- fixed: (1, D)
      gamma.reshape(1, D), beta.reshape(1, D))
    return out.reshape(B, S, D)


def linear_logsoftmax(x, w, b):
    M, D = x.shape
    V = w.shape[1]
    TM = _row_tile(M)
    return pl.pallas_call(
        _linear_logsoftmax_kernel,
        out_shape=jax.ShapeDtypeStruct((M, V), jnp.float32),
        grid=(pl.cdiv(M, TM),),
        in_specs=[
            pl.BlockSpec((TM, D), lambda i: (i, 0)),
            pl.BlockSpec((D, V), lambda i: (0, 0)),
            pl.BlockSpec((1, V), lambda i: (0, 0)),
        ],
        out_specs=pl.BlockSpec((TM, V), lambda i: (i, 0)),
        compiler_params=pltpu.CompilerParams(
            dimension_semantics=("parallel",),
            vmem_limit_bytes=VMEM_LIMIT),
    )(x, w.astype(jnp.bfloat16), b.reshape(1, V))


# ----------------------------------------------------------- model pieces ---

def encoder_layer(x, p, num_heads):
    x = fused_mha_ln(x, x, p["attn"], p["ln1_g"], p["ln1_b"],
                     num_heads, causal=False)
    x = fused_ffn_ln(x, p["w1"], p["b1"], p["w2"], p["b2"],
                     p["ln2_g"], p["ln2_b"])
    return x


def decoder_layer(y, enc_out, p, num_heads):
    y = fused_mha_ln(y, y, p["self_attn"], p["ln1_g"], p["ln1_b"],
                     num_heads, causal=True)
    y = fused_mha_ln(y, enc_out, p["cross_attn"], p["ln2_g"], p["ln2_b"],
                     num_heads, causal=False)
    y = fused_ffn_ln(y, p["w1"], p["b1"], p["w2"], p["b2"],
                     p["ln3_g"], p["ln3_b"])
    return y


def custom_transformer_forward(params, src, tgt, *, num_heads):
    D = params["embed"].shape[1]
    emb_scale = math.sqrt(D)

    # Embedding gather + scale + positional encoding: plain JAX (XLA-fused).
    src_emb = jnp.take(params["embed"], src, axis=0) * emb_scale \
        + params["pe"][: src.shape[1]]
    tgt_emb = jnp.take(params["embed"], tgt, axis=0) * emb_scale \
        + params["pe"][: tgt.shape[1]]

    # Encoder stack (no source mask).
    x = src_emb
    for lp in params["enc_layers"]:
        x = encoder_layer(x, lp, num_heads)
    enc_out = x

    # Decoder stack (causal self-attention, unmasked cross-attention).
    y = tgt_emb
    for lp in params["dec_layers"]:
        y = decoder_layer(y, enc_out, lp, num_heads)

    # fc_out + LogSoftmax(dim=-1), fused.
    B, S, _ = y.shape
    out = linear_logsoftmax(y.reshape(B * S, D), params["fc_w"], params["fc_b"])
    return out.reshape(B, S, -1)


# ---------------------------------------------------------- param builder ---

def sinusoidal_pe(max_len, D):
    pos = jnp.arange(max_len, dtype=jnp.float32)[:, None]
    i = jnp.arange(0, D, 2, dtype=jnp.float32)
    div = jnp.exp(-math.log(10000.0) * i / D)
    pe = jnp.zeros((max_len, D), jnp.float32)
    pe = pe.at[:, 0::2].set(jnp.sin(pos * div))
    pe = pe.at[:, 1::2].set(jnp.cos(pos * div))
    return pe


def init_params(key, vocab, D, d_ff, n_enc, n_dec, max_len):
    keys = iter(jax.random.split(key, 256))

    def w(shape, std=0.02):
        return jax.random.normal(next(keys), shape, jnp.float32) * std

    def attn_params():
        return dict(
            wq=w((D, D)), bq=jnp.zeros((D,), jnp.float32),
            wk=w((D, D)), bk=jnp.zeros((D,), jnp.float32),
            wv=w((D, D)), bv=jnp.zeros((D,), jnp.float32),
            wo=w((D, D)), bo=jnp.zeros((D,), jnp.float32),
        )

    def enc_layer():
        return dict(
            attn=attn_params(),
            ln1_g=jnp.ones((D,), jnp.float32), ln1_b=jnp.zeros((D,), jnp.float32),
            w1=w((D, d_ff)), b1=jnp.zeros((d_ff,), jnp.float32),
            w2=w((d_ff, D)), b2=jnp.zeros((D,), jnp.float32),
            ln2_g=jnp.ones((D,), jnp.float32), ln2_b=jnp.zeros((D,), jnp.float32),
        )

    def dec_layer():
        return dict(
            self_attn=attn_params(),
            cross_attn=attn_params(),
            ln1_g=jnp.ones((D,), jnp.float32), ln1_b=jnp.zeros((D,), jnp.float32),
            ln2_g=jnp.ones((D,), jnp.float32), ln2_b=jnp.zeros((D,), jnp.float32),
            ln3_g=jnp.ones((D,), jnp.float32), ln3_b=jnp.zeros((D,), jnp.float32),
            w1=w((D, d_ff)), b1=jnp.zeros((d_ff,), jnp.float32),
            w2=w((d_ff, D)), b2=jnp.zeros((D,), jnp.float32),
        )

    return dict(
        embed=w((vocab, D), std=1.0),
        pe=sinusoidal_pe(max_len, D),
        enc_layers=[enc_layer() for _ in range(n_enc)],
        dec_layers=[dec_layer() for _ in range(n_dec)],
        fc_w=w((D, vocab)),
        fc_b=jnp.zeros((vocab,), jnp.float32),
    )


# ------------------------------------------------------------------- main ---

if __name__ == "__main__":
    B, S_SRC, S_TGT = 2, 8, 8
    D_MODEL, N_HEADS, D_FF, VOCAB = 32, 4, 64, 50
    N_ENC, N_DEC, MAX_LEN = 2, 2, 16

    key = jax.random.PRNGKey(0)
    pkey, skey, tkey = jax.random.split(key, 3)

    params = init_params(pkey, VOCAB, D_MODEL, D_FF, N_ENC, N_DEC, MAX_LEN)
    src = jax.random.randint(skey, (B, S_SRC), 0, VOCAB, dtype=jnp.int32)
    tgt = jax.random.randint(tkey, (B, S_TGT), 0, VOCAB, dtype=jnp.int32)

    fwd = jax.jit(functools.partial(custom_transformer_forward,
                                    num_heads=N_HEADS))
    out = jax.block_until_ready(fwd(params, src, tgt))

    assert out.shape == (B, S_TGT, VOCAB), out.shape
    # LogSoftmax rows must exponentiate-sum to 1
    assert bool(jnp.allclose(jnp.exp(out).sum(-1), 1.0, atol=1e-3))
    assert bool(jnp.all(jnp.isfinite(out)))
    print("KERNEL_OK")
</pallas_src>

<mosaic_0001>
module attributes {stable_mosaic.version = 11 : i64} {
  func.func @_fused_ffn_ln_kernel(%arg0: i32, %arg1: memref<16x32xf32, #tpu.memory_space<vmem>>, %arg2: memref<32x64xbf16, #tpu.memory_space<vmem>>, %arg3: memref<1x64xf32, #tpu.memory_space<vmem>>, %arg4: memref<64x32xbf16, #tpu.memory_space<vmem>>, %arg5: memref<1x32xf32, #tpu.memory_space<vmem>>, %arg6: memref<1x32xf32, #tpu.memory_space<vmem>>, %arg7: memref<1x32xf32, #tpu.memory_space<vmem>>, %arg8: memref<16x32xf32, #tpu.memory_space<vmem>>) attributes {dimension_semantics = [#tpu.dimension_semantics<parallel>], iteration_bounds = array<i64: 1>, scalar_prefetch = 0 : i64, scratch_operands = 0 : i64, tpu.core_type = #tpu.core_type<tc>, window_params = [{transform_indices = @transform_0, window_bounds = array<i64: 16, 32>}, {pipeline_mode = #tpu.pipeline_mode<synchronous>, transform_indices = @transform_1, window_bounds = array<i64: 32, 64>}, {pipeline_mode = #tpu.pipeline_mode<synchronous>, transform_indices = @transform_2, window_bounds = array<i64: 1, 64>}, {pipeline_mode = #tpu.pipeline_mode<synchronous>, transform_indices = @transform_3, window_bounds = array<i64: 64, 32>}, {pipeline_mode = #tpu.pipeline_mode<synchronous>, transform_indices = @transform_4, window_bounds = array<i64: 1, 32>}, {pipeline_mode = #tpu.pipeline_mode<synchronous>, transform_indices = @transform_5, window_bounds = array<i64: 1, 32>}, {pipeline_mode = #tpu.pipeline_mode<synchronous>, transform_indices = @transform_6, window_bounds = array<i64: 1, 32>}, {transform_indices = @transform_7, window_bounds = array<i64: 16, 32>}]} {
    %c0 = arith.constant 0 : index
    %c0_0 = arith.constant 0 : index
    %0 = vector.load %arg1[%c0, %c0_0] : memref<16x32xf32, #tpu.memory_space<vmem>>, vector<16x32xf32>
    %1 = arith.truncf %0 : vector<16x32xf32> to vector<16x32xbf16>
    %c0_1 = arith.constant 0 : index
    %c0_2 = arith.constant 0 : index
    %2 = vector.load %arg2[%c0_1, %c0_2] : memref<32x64xbf16, #tpu.memory_space<vmem>>, vector<32x64xbf16>
    %cst = arith.constant dense<0.000000e+00> : vector<16x64xf32>
    %3 = tpu.matmul %1, %2, %cst {dimension_numbers = #tpu.dot_dimension_numbers<[1], [0], [0], [1], [0, 0, 1, 1], [], []>} : vector<16x32xbf16>, vector<32x64xbf16>, vector<16x64xf32> -> vector<16x64xf32>
    %c0_3 = arith.constant 0 : index
    %c0_4 = arith.constant 0 : index
    %4 = vector.load %arg3[%c0_3, %c0_4] : memref<1x64xf32, #tpu.memory_space<vmem>>, vector<1x64xf32>
    %5 = vector.broadcast %4 : vector<1x64xf32> to vector<16x64xf32>
    %6 = arith.addf %3, %5 : vector<16x64xf32>
    %cst_5 = arith.constant 0.000000e+00 : f32
    %7 = vector.broadcast %cst_5 : f32 to vector<16x64xf32>
    %8 = arith.maximumf %6, %7 : vector<16x64xf32>
    %9 = arith.truncf %8 : vector<16x64xf32> to vector<16x64xbf16>
    %c0_6 = arith.constant 0 : index
    %c0_7 = arith.constant 0 : index
    %10 = vector.load %arg4[%c0_6, %c0_7] : memref<64x32xbf16, #tpu.memory_space<vmem>>, vector<64x32xbf16>
    %cst_8 = arith.constant dense<0.000000e+00> : vector<16x32xf32>
    %11 = tpu.matmul %9, %10, %cst_8 {dimension_numbers = #tpu.dot_dimension_numbers<[1], [0], [0], [1], [0, 0, 1, 1], [], []>} : vector<16x64xbf16>, vector<64x32xbf16>, vector<16x32xf32> -> vector<16x32xf32>
    %c0_9 = arith.constant 0 : index
    %c0_10 = arith.constant 0 : index
    %12 = vector.load %arg5[%c0_9, %c0_10] : memref<1x32xf32, #tpu.memory_space<vmem>>, vector<1x32xf32>
    %13 = vector.broadcast %12 : vector<1x32xf32> to vector<16x32xf32>
    %14 = arith.addf %11, %13 : vector<16x32xf32>
    %15 = arith.addf %14, %0 : vector<16x32xf32>
    %cst_11 = arith.constant dense<0.000000e+00> : vector<16xf32>
    %16 = vector.multi_reduction <add>, %15, %cst_11 [1] : vector<16x32xf32> to vector<16xf32>
    %17 = vector.shape_cast %16 : vector<16xf32> to vector<16x1xf32>
    %cst_12 = arith.constant 3.200000e+01 : f32
    %18 = vector.broadcast %cst_12 : f32 to vector<16x1xf32>
    %19 = arith.divf %17, %18 : vector<16x1xf32>
    %20 = vector.broadcast %19 : vector<16x1xf32> to vector<16x32xf32>
    %21 = arith.subf %15, %20 : vector<16x32xf32>
    %22 = arith.mulf %21, %21 : vector<16x32xf32>
    %cst_13 = arith.constant dense<0.000000e+00> : vector<16xf32>
    %23 = vector.multi_reduction <add>, %22, %cst_13 [1] : vector<16x32xf32> to vector<16xf32>
    %24 = vector.shape_cast %23 : vector<16xf32> to vector<16x1xf32>
    %cst_14 = arith.constant 3.200000e+01 : f32
    %25 = vector.broadcast %cst_14 : f32 to vector<16x1xf32>
    %26 = arith.divf %24, %25 : vector<16x1xf32>
    %27 = vector.broadcast %19 : vector<16x1xf32> to vector<16x32xf32>
    %28 = arith.subf %15, %27 : vector<16x32xf32>
    %cst_15 = arith.constant 9.99999974E-6 : f32
    %29 = vector.broadcast %cst_15 : f32 to vector<16x1xf32>
    %30 = arith.addf %26, %29 : vector<16x1xf32>
    %31 = math.rsqrt %30 : vector<16x1xf32>
    %32 = vector.broadcast %31 : vector<16x1xf32> to vector<16x32xf32>
    %33 = arith.mulf %28, %32 : vector<16x32xf32>
    %c0_16 = arith.constant 0 : index
    %c0_17 = arith.constant 0 : index
    %34 = vector.load %arg6[%c0_16, %c0_17] : memref<1x32xf32, #tpu.memory_space<vmem>>, vector<1x32xf32>
    %35 = vector.broadcast %34 : vector<1x32xf32> to vector<16x32xf32>
    %36 = arith.mulf %33, %35 : vector<16x32xf32>
    %c0_18 = arith.constant 0 : index
    %c0_19 = arith.constant 0 : index
    %37 = vector.load %arg7[%c0_18, %c0_19] : memref<1x32xf32, #tpu.memory_space<vmem>>, vector<1x32xf32>
    %38 = vector.broadcast %37 : vector<1x32xf32> to vector<16x32xf32>
    %39 = arith.addf %36, %38 : vector<16x32xf32>
    %c0_20 = arith.constant 0 : index
    %c0_21 = arith.constant 0 : index
    %40 = vector.load %arg8[%c0_20, %c0_21] : memref<16x32xf32, #tpu.memory_space<vmem>>, vector<16x32xf32>
    tpu.vector_store %arg8[%c0_20, %c0_21], %39 {strides = array<i32>} : memref<16x32xf32, #tpu.memory_space<vmem>>, vector<16x32xf32>,
    return
  }
  func.func @transform_0(%arg0: i32) -> (i32, i32) {
    %c0_i32 = arith.constant 0 : i32
    %c0_i32_0 = arith.constant 0 : i32
    return %arg0, %c0_i32 : i32, i32
  }
  func.func @transform_1(%arg0: i32) -> (i32, i32) {
    %c0_i32 = arith.constant 0 : i32
    %c0_i32_0 = arith.constant 0 : i32
    %c0_i32_1 = arith.constant 0 : i32
    return %c0_i32, %c0_i32_0 : i32, i32
  }
  func.func @transform_2(%arg0: i32) -> (i32, i32) {
    %c0_i32 = arith.constant 0 : i32
    %c0_i32_0 = arith.constant 0 : i32
    %c0_i32_1 = arith.constant 0 : i32
    return %c0_i32, %c0_i32_0 : i32, i32
  }
  func.func @transform_3(%arg0: i32) -> (i32, i32) {
    %c0_i32 = arith.constant 0 : i32
    %c0_i32_0 = arith.constant 0 : i32
    %c0_i32_1 = arith.constant 0 : i32
    return %c0_i32, %c0_i32_0 : i32, i32
  }
  func.func @transform_4(%arg0: i32) -> (i32, i32) {
    %c0_i32 = arith.constant 0 : i32
    %c0_i32_0 = arith.constant 0 : i32
    %c0_i32_1 = arith.constant 0 : i32
    return %c0_i32, %c0_i32_0 : i32, i32
  }
  func.func @transform_5(%arg0: i32) -> (i32, i32) {
    %c0_i32 = arith.constant 0 : i32
    %c0_i32_0 = arith.constant 0 : i32
    %c0_i32_1 = arith.constant 0 : i32
    return %c0_i32, %c0_i32_0 : i32, i32
  }
  func.func @transform_6(%arg0: i32) -> (i32, i32) {
    %c0_i32 = arith.constant 0 : i32
    %c0_i32_0 = arith.constant 0 : i32
    %c0_i32_1 = arith.constant 0 : i32
    return %c0_i32, %c0_i32_0 : i32, i32
  }
  func.func @transform_7(%arg0: i32) -> (i32, i32) {
    %c0_i32 = arith.constant 0 : i32
    %c0_i32_0 = arith.constant 0 : i32
    return %arg0, %c0_i32 : i32, i32
  }
}

module attributes {stable_mosaic.version = 11 : i64} {
  func.func @_fused_mha_ln_kernel(%arg0: i32, %arg1: memref<1x8x32xf32, #tpu.memory_space<vmem>>, %arg2: memref<1x8x32xf32, #tpu.memory_space<vmem>>, %arg3: memref<4x32x8xbf16, #tpu.memory_space<vmem>>, %arg4: memref<4x32x8xbf16, #tpu.memory_space<vmem>>, %arg5: memref<4x32x8xbf16, #tpu.memory_space<vmem>>, %arg6: memref<4x8x32xbf16, #tpu.memory_space<vmem>>, %arg7: memref<4x1x8xf32, #tpu.memory_space<vmem>>, %arg8: memref<4x1x8xf32, #tpu.memory_space<vmem>>, %arg9: memref<4x1x8xf32, #tpu.memory_space<vmem>>, %arg10: memref<1x32xf32, #tpu.memory_space<vmem>>, %arg11: memref<1x32xf32, #tpu.memory_space<vmem>>, %arg12: memref<1x32xf32, #tpu.memory_space<vmem>>, %arg13: memref<1x8x32xf32, #tpu.memory_space<vmem>>) attributes {dimension_semantics = [#tpu.dimension_semantics<parallel>], iteration_bounds = array<i64: 2>, scalar_prefetch = 0 : i64, scratch_operands = 0 : i64, tpu.core_type = #tpu.core_type<tc>, window_params = [{transform_indices = @transform_0, window_bounds = array<i64: 1, 8, 32>}, {transform_indices = @transform_1, window_bounds = array<i64: 1, 8, 32>}, {pipeline_mode = #tpu.pipeline_mode<synchronous>, transform_indices = @transform_2, window_bounds = array<i64: 4, 32, 8>}, {pipeline_mode = #tpu.pipeline_mode<synchronous>, transform_indices = @transform_3, window_bounds = array<i64: 4, 32, 8>}, {pipeline_mode = #tpu.pipeline_mode<synchronous>, transform_indices = @transform_4, window_bounds = array<i64: 4, 32, 8>}, {pipeline_mode = #tpu.pipeline_mode<synchronous>, transform_indices = @transform_5, window_bounds = array<i64: 4, 8, 32>}, {pipeline_mode = #tpu.pipeline_mode<synchronous>, transform_indices = @transform_6, window_bounds = array<i64: 4, 1, 8>}, {pipeline_mode = #tpu.pipeline_mode<synchronous>, transform_indices = @transform_7, window_bounds = array<i64: 4, 1, 8>}, {pipeline_mode = #tpu.pipeline_mode<synchronous>, transform_indices = @transform_8, window_bounds = array<i64: 4, 1, 8>}, {pipeline_mode = #tpu.pipeline_mode<synchronous>, transform_indices = @transform_9, window_bounds = array<i64: 1, 32>}, {pipeline_mode = #tpu.pipeline_mode<synchronous>, transform_indices = @transform_10, window_bounds = array<i64: 1, 32>}, {pipeline_mode = #tpu.pipeline_mode<synchronous>, transform_indices = @transform_11, window_bounds = array<i64: 1, 32>}, {transform_indices = @transform_12, window_bounds = array<i64: 1, 8, 32>}]} {
    %c0 = arith.constant 0 : index
    %c0_0 = arith.constant 0 : index
    %c0_1 = arith.constant 0 : index
    %0 = vector.load %arg1[%c0, %c0_0, %c0_1] : memref<1x8x32xf32, #tpu.memory_space<vmem>>, vector<1x8x32xf32>
    %1 = vector.shape_cast %0 : vector<1x8x32xf32> to vector<8x32xf32>
    %c0_2 = arith.constant 0 : index
    %c0_3 = arith.constant 0 : index
    %c0_4 = arith.constant 0 : index
    %2 = vector.load %arg2[%c0_2, %c0_3, %c0_4] : memref<1x8x32xf32, #tpu.memory_space<vmem>>, vector<1x8x32xf32>
    %3 = vector.shape_cast %2 : vector<1x8x32xf32> to vector<8x32xf32>
    %4 = arith.truncf %1 : vector<8x32xf32> to vector<8x32xbf16>
    %5 = vector.shape_cast %4 : vector<8x32xbf16> to vector<1x8x32xbf16>
    %6 = vector.shape_cast %5 : vector<1x8x32xbf16> to vector<1x8x32xbf16>
    %7 = vector.broadcast %6 : vector<1x8x32xbf16> to vector<4x8x32xbf16>
    %8 = arith.truncf %3 : vector<8x32xf32> to vector<8x32xbf16>
    %9 = vector.shape_cast %8 : vector<8x32xbf16> to vector<1x8x32xbf16>
    %10 = vector.shape_cast %9 : vector<1x8x32xbf16> to vector<1x8x32xbf16>
    %11 = vector.broadcast %10 : vector<1x8x32xbf16> to vector<4x8x32xbf16>
    %c0_5 = arith.constant 0 : index
    %c0_6 = arith.constant 0 : index
    %c0_7 = arith.constant 0 : index
    %12 = vector.load %arg3[%c0_5, %c0_6, %c0_7] : memref<4x32x8xbf16, #tpu.memory_space<vmem>>, vector<4x32x8xbf16>
    "tpu.trace_start"() <{level = 10 : i32, message = "hsd,hde->hse"}> : () -> ()
    %cst = arith.constant dense<0.000000e+00> : vector<4x8x8xf32>
    %13 = tpu.matmul %7, %12, %cst {dimension_numbers = #tpu.dot_dimension_numbers<[2], [1], [1], [2], [0, 0, 0, 1, 1, 2], [0], [0]>} : vector<4x8x32xbf16>, vector<4x32x8xbf16>, vector<4x8x8xf32> -> vector<4x8x8xf32>
    "tpu.trace_stop"() : () -> ()
    %c0_8 = arith.constant 0 : index
    %c0_9 = arith.constant 0 : index
    %c0_10 = arith.constant 0 : index
    %14 = vector.load %arg7[%c0_8, %c0_9, %c0_10] : memref<4x1x8xf32, #tpu.memory_space<vmem>>, vector<4x1x8xf32>
    %15 = vector.broadcast %14 : vector<4x1x8xf32> to vector<4x8x8xf32>
    %16 = arith.addf %13, %15 : vector<4x8x8xf32>
    %c0_11 = arith.constant 0 : index
    %c0_12 = arith.constant 0 : index
    %c0_13 = arith.constant 0 : index
    %17 = vector.load %arg4[%c0_11, %c0_12, %c0_13] : memref<4x32x8xbf16, #tpu.memory_space<vmem>>, vector<4x32x8xbf16>
    "tpu.trace_start"() <{level = 10 : i32, message = "hsd,hde->hse"}> : () -> ()
    %cst_14 = arith.constant dense<0.000000e+00> : vector<4x8x8xf32>
    %18 = tpu.matmul %11, %17, %cst_14 {dimension_numbers = #tpu.dot_dimension_numbers<[2], [1], [1], [2], [0, 0, 0, 1, 1, 2], [0], [0]>} : vector<4x8x32xbf16>, vector<4x32x8xbf16>, vector<4x8x8xf32> -> vector<4x8x8xf32>
    "tpu.trace_stop"() : () -> ()
    %c0_15 = arith.constant 0 : index
    %c0_16 = arith.constant 0 : index
    %c0_17 = arith.constant 0 : index
    %19 = vector.load %arg8[%c0_15, %c0_16, %c0_17] : memref<4x1x8xf32, #tpu.memory_space<vmem>>, vector<4x1x8xf32>
    %20 = vector.broadcast %19 : vector<4x1x8xf32> to vector<4x8x8xf32>
    %21 = arith.addf %18, %20 : vector<4x8x8xf32>
    %c0_18 = arith.constant 0 : index
    %c0_19 = arith.constant 0 : index
    %c0_20 = arith.constant 0 : index
    %22 = vector.load %arg5[%c0_18, %c0_19, %c0_20] : memref<4x32x8xbf16, #tpu.memory_space<vmem>>, vector<4x32x8xbf16>
    "tpu.trace_start"() <{level = 10 : i32, message = "hsd,hde->hse"}> : () -> ()
    %cst_21 = arith.constant dense<0.000000e+00> : vector<4x8x8xf32>
    %23 = tpu.matmul %11, %22, %cst_21 {dimension_numbers = #tpu.dot_dimension_numbers<[2], [1], [1], [2], [0, 0, 0, 1, 1, 2], [0], [0]>} : vector<4x8x32xbf16>, vector<4x32x8xbf16>, vector<4x8x8xf32> -> vector<4x8x8xf32>
    "tpu.trace_stop"() : () -> ()
    %c0_22 = arith.constant 0 : index
    %c0_23 = arith.constant 0 : index
    %c0_24 = arith.constant 0 : index
    %24 = vector.load %arg9[%c0_22, %c0_23, %c0_24] : memref<4x1x8xf32, #tpu.memory_space<vmem>>, vector<4x1x8xf32>
    %25 = vector.broadcast %24 : vector<4x1x8xf32> to vector<4x8x8xf32>
    %26 = arith.addf %23, %25 : vector<4x8x8xf32>
    %27 = arith.truncf %16 : vector<4x8x8xf32> to vector<4x8x8xbf16>
    %28 = arith.truncf %21 : vector<4x8x8xf32> to vector<4x8x8xbf16>
    "tpu.trace_start"() <{level = 10 : i32, message = "hqe,hke->hqk"}> : () -> ()
    %cst_25 = arith.constant dense<0.000000e+00> : vector<4x8x8xf32>
    %29 = tpu.matmul %27, %28, %cst_25 {dimension_numbers = #tpu.dot_dimension_numbers<[2], [2], [1], [1], [0, 0, 0, 1, 1, 1], [0], [0]>} : vector<4x8x8xbf16>, vector<4x8x8xbf16>, vector<4x8x8xf32> -> vector<4x8x8xf32>
    "tpu.trace_stop"() : () -> ()
    %cst_26 = arith.constant 0.353553385 : f32
    %30 = vector.broadcast %cst_26 : f32 to vector<4x8x8xf32>
    %31 = arith.mulf %29, %30 : vector<4x8x8xf32>
    %32 = tpu.iota {dimensions = array<i32: 0>} : vector<8x8xi32>
    %33 = tpu.iota {dimensions = array<i32: 1>} : vector<8x8xi32>
    %34 = arith.cmpi sle, %33, %32 : vector<8x8xi32>
    %35 = vector.shape_cast %34 : vector<8x8xi1> to vector<1x8x8xi1>
    %cst_27 = arith.constant -1.000000e+30 : f32
    %36 = vector.shape_cast %35 : vector<1x8x8xi1> to vector<1x8x8xi1>
    %37 = vector.broadcast %36 : vector<1x8x8xi1> to vector<4x8x8xi1>
    %38 = vector.broadcast %cst_27 : f32 to vector<4x8x8xf32>
    %39 = arith.select %37, %31, %38 : vector<4x8x8xi1>, vector<4x8x8xf32>
    %cst_28 = arith.constant dense<0xFF800000> : vector<4x8xf32>
    %40 = vector.multi_reduction <maximumf>, %39, %cst_28 [2] : vector<4x8x8xf32> to vector<4x8xf32>
    %41 = vector.shape_cast %40 : vector<4x8xf32> to vector<4x8x1xf32>
    %42 = vector.broadcast %41 : vector<4x8x1xf32> to vector<4x8x8xf32>
    %43 = arith.subf %39, %42 : vector<4x8x8xf32>
    %44 = math.exp %43 : vector<4x8x8xf32>
    %cst_29 = arith.constant dense<0.000000e+00> : vector<4x8xf32>
    %45 = vector.multi_reduction <add>, %44, %cst_29 [2] : vector<4x8x8xf32> to vector<4x8xf32>
    %46 = vector.shape_cast %45 : vector<4x8xf32> to vector<4x8x1xf32>
    %47 = vector.broadcast %46 : vector<4x8x1xf32> to vector<4x8x8xf32>
    %48 = arith.divf %44, %47 : vector<4x8x8xf32>
    %49 = arith.truncf %48 : vector<4x8x8xf32> to vector<4x8x8xbf16>
    %50 = arith.truncf %26 : vector<4x8x8xf32> to vector<4x8x8xbf16>
    "tpu.trace_start"() <{level = 10 : i32, message = "hqk,hke->hqe"}> : () -> ()
    %cst_30 = arith.constant dense<0.000000e+00> : vector<4x8x8xf32>
    %51 = tpu.matmul %49, %50, %cst_30 {dimension_numbers = #tpu.dot_dimension_numbers<[2], [1], [1], [2], [0, 0, 0, 1, 1, 2], [0], [0]>} : vector<4x8x8xbf16>, vector<4x8x8xbf16>, vector<4x8x8xf32> -> vector<4x8x8xf32>
    "tpu.trace_stop"() : () -> ()
    %52 = arith.truncf %51 : vector<4x8x8xf32> to vector<4x8x8xbf16>
    %c0_31 = arith.constant 0 : index
    %c0_32 = arith.constant 0 : index
    %c0_33 = arith.constant 0 : index
    %53 = vector.load %arg6[%c0_31, %c0_32, %c0_33] : memref<4x8x32xbf16, #tpu.memory_space<vmem>>, vector<4x8x32xbf16>
    "tpu.trace_start"() <{level = 10 : i32, message = "hqe,hed->hqd"}> : () -> ()
    %cst_34 = arith.constant dense<0.000000e+00> : vector<4x8x32xf32>
    %54 = tpu.matmul %52, %53, %cst_34 {dimension_numbers = #tpu.dot_dimension_numbers<[2], [1], [1], [2], [0, 0, 0, 1, 1, 2], [0], [0]>} : vector<4x8x8xbf16>, vector<4x8x32xbf16>, vector<4x8x32xf32> -> vector<4x8x32xf32>
    "tpu.trace_stop"() : () -> ()
    %cst_35 = arith.constant dense<0.000000e+00> : vector<8x32xf32>
    %55 = vector.multi_reduction <add>, %54, %cst_35 [0] : vector<4x8x32xf32> to vector<8x32xf32>
    %c0_36 = arith.constant 0 : index
    %c0_37 = arith.constant 0 : index
    %56 = vector.load %arg10[%c0_36, %c0_37] : memref<1x32xf32, #tpu.memory_space<vmem>>, vector<1x32xf32>
    %57 = vector.broadcast %56 : vector<1x32xf32> to vector<8x32xf32>
    %58 = arith.addf %55, %57 : vector<8x32xf32>
    %59 = arith.addf %58, %1 : vector<8x32xf32>
    %cst_38 = arith.constant dense<0.000000e+00> : vector<8xf32>
    %60 = vector.multi_reduction <add>, %59, %cst_38 [1] : vector<8x32xf32> to vector<8xf32>
    %61 = vector.shape_cast %60 : vector<8xf32> to vector<8x1xf32>
    %cst_39 = arith.constant 3.200000e+01 : f32
    %62 = vector.broadcast %cst_39 : f32 to vector<8x1xf32>
    %63 = arith.divf %61, %62 : vector<8x1xf32>
    %64 = vector.broadcast %63 : vector<8x1xf32> to vector<8x32xf32>
    %65 = arith.subf %59, %64 : vector<8x32xf32>
    %66 = arith.mulf %65, %65 : vector<8x32xf32>
    %cst_40 = arith.constant dense<0.000000e+00> : vector<8xf32>
    %67 = vector.multi_reduction <add>, %66, %cst_40 [1] : vector<8x32xf32> to vector<8xf32>
    %68 = vector.shape_cast %67 : vector<8xf32> to vector<8x1xf32>
    %cst_41 = arith.constant 3.200000e+01 : f32
    %69 = vector.broadcast %cst_41 : f32 to vector<8x1xf32>
    %70 = arith.divf %68, %69 : vector<8x1xf32>
    %71 = vector.broadcast %63 : vector<8x1xf32> to vector<8x32xf32>
    %72 = arith.subf %59, %71 : vector<8x32xf32>
    %cst_42 = arith.constant 9.99999974E-6 : f32
    %73 = vector.broadcast %cst_42 : f32 to vector<8x1xf32>
    %74 = arith.addf %70, %73 : vector<8x1xf32>
    %75 = math.rsqrt %74 : vector<8x1xf32>
    %76 = vector.broadcast %75 : vector<8x1xf32> to vector<8x32xf32>
    %77 = arith.mulf %72, %76 : vector<8x32xf32>
    %c0_43 = arith.constant 0 : index
    %c0_44 = arith.constant 0 : index
    %78 = vector.load %arg11[%c0_43, %c0_44] : memref<1x32xf32, #tpu.memory_space<vmem>>, vector<1x32xf32>
    %79 = vector.broadcast %78 : vector<1x32xf32> to vector<8x32xf32>
    %80 = arith.mulf %77, %79 : vector<8x32xf32>
    %c0_45 = arith.constant 0 : index
    %c0_46 = arith.constant 0 : index
    %81 = vector.load %arg12[%c0_45, %c0_46] : memref<1x32xf32, #tpu.memory_space<vmem>>, vector<1x32xf32>
    %82 = vector.broadcast %81 : vector<1x32xf32> to vector<8x32xf32>
    %83 = arith.addf %80, %82 : vector<8x32xf32>
    %c0_47 = arith.constant 0 : index
    %c0_48 = arith.constant 0 : index
    %c0_49 = arith.constant 0 : index
    %84 = vector.load %arg13[%c0_47, %c0_48, %c0_49] : memref<1x8x32xf32, #tpu.memory_space<vmem>>, vector<1x8x32xf32>
    %85 = vector.shape_cast %84 : vector<1x8x32xf32> to vector<8x32xf32>
    %86 = vector.shape_cast %83 : vector<8x32xf32> to vector<1x8x32xf32>
    tpu.vector_store %arg13[%c0_47, %c0_48, %c0_49], %86 {strides = array<i32>} : memref<1x8x32xf32, #tpu.memory_space<vmem>>, vector<1x8x32xf32>,
    return
  }
  func.func @transform_0(%arg0: i32) -> (i32, i32, i32) {
    %c0_i32 = arith.constant 0 : i32
    %c0_i32_0 = arith.constant 0 : i32
    %c0_i32_1 = arith.constant 0 : i32
    return %arg0, %c0_i32, %c0_i32_0 : i32, i32, i32
  }
  func.func @transform_1(%arg0: i32) -> (i32, i32, i32) {
    %c0_i32 = arith.constant 0 : i32
    %c0_i32_0 = arith.constant 0 : i32
    %c0_i32_1 = arith.constant 0 : i32
    return %arg0, %c0_i32, %c0_i32_0 : i32, i32, i32
  }
  func.func @transform_2(%arg0: i32) -> (i32, i32, i32) {
    %c0_i32 = arith.constant 0 : i32
    %c0_i32_0 = arith.constant 0 : i32
    %c0_i32_1 = arith.constant 0 : i32
    %c0_i32_2 = arith.constant 0 : i32
    return %c0_i32, %c0_i32_0, %c0_i32_1 : i32, i32, i32
  }
  func.func @transform_3(%arg0: i32) -> (i32, i32, i32) {
    %c0_i32 = arith.constant 0 : i32
    %c0_i32_0 = arith.constant 0 : i32
    %c0_i32_1 = arith.constant 0 : i32
    %c0_i32_2 = arith.constant 0 : i32
    return %c0_i32, %c0_i32_0, %c0_i32_1 : i32, i32, i32
  }
  func.func @transform_4(%arg0: i32) -> (i32, i32, i32) {
    %c0_i32 = arith.constant 0 : i32
    %c0_i32_0 = arith.constant 0 : i32
    %c0_i32_1 = arith.constant 0 : i32
    %c0_i32_2 = arith.constant 0 : i32
    return %c0_i32, %c0_i32_0, %c0_i32_1 : i32, i32, i32
  }
  func.func @transform_5(%arg0: i32) -> (i32, i32, i32) {
    %c0_i32 = arith.constant 0 : i32
    %c0_i32_0 = arith.constant 0 : i32
    %c0_i32_1 = arith.constant 0 : i32
    %c0_i32_2 = arith.constant 0 : i32
    return %c0_i32, %c0_i32_0, %c0_i32_1 : i32, i32, i32
  }
  func.func @transform_6(%arg0: i32) -> (i32, i32, i32) {
    %c0_i32 = arith.constant 0 : i32
    %c0_i32_0 = arith.constant 0 : i32
    %c0_i32_1 = arith.constant 0 : i32
    %c0_i32_2 = arith.constant 0 : i32
    return %c0_i32, %c0_i32_0, %c0_i32_1 : i32, i32, i32
  }
  func.func @transform_7(%arg0: i32) -> (i32, i32, i32) {
    %c0_i32 = arith.constant 0 : i32
    %c0_i32_0 = arith.constant 0 : i32
    %c0_i32_1 = arith.constant 0 : i32
    %c0_i32_2 = arith.constant 0 : i32
    return %c0_i32, %c0_i32_0, %c0_i32_1 : i32, i32, i32
  }
  func.func @transform_8(%arg0: i32) -> (i32, i32, i32) {
    %c0_i32 = arith.constant 0 : i32
    %c0_i32_0 = arith.constant 0 : i32
    %c0_i32_1 = arith.constant 0 : i32
    %c0_i32_2 = arith.constant 0 : i32
    return %c0_i32, %c0_i32_0, %c0_i32_1 : i32, i32, i32
  }
  func.func @transform_9(%arg0: i32) -> (i32, i32) {
    %c0_i32 = arith.constant 0 : i32
    %c0_i32_0 = arith.constant 0 : i32
    %c0_i32_1 = arith.constant 0 : i32
    return %c0_i32, %c0_i32_0 : i32, i32
  }
  func.func @transform_10(%arg0: i32) -> (i32, i32) {
    %c0_i32 = arith.constant 0 : i32
    %c0_i32_0 = arith.constant 0 : i32
    %c0_i32_1 = arith.constant 0 : i32
    return %c0_i32, %c0_i32_0 : i32, i32
  }
  func.func @transform_11(%arg0: i32) -> (i32, i32) {
    %c0_i32 = arith.constant 0 : i32
    %c0_i32_0 = arith.constant 0 : i32
    %c0_i32_1 = arith.constant 0 : i32
    return %c0_i32, %c0_i32_0 : i32, i32
  }
  func.func @transform_12(%arg0: i32) -> (i32, i32, i32) {
    %c0_i32 = arith.constant 0 : i32
    %c0_i32_0 = arith.constant 0 : i32
    %c0_i32_1 = arith.constant 0 : i32
    return %arg0, %c0_i32, %c0_i32_0 : i32, i32, i32
  }
}

module attributes {stable_mosaic.version = 11 : i64} {
  func.func @_fused_mha_ln_kernel(%arg0: i32, %arg1: memref<1x8x32xf32, #tpu.memory_space<vmem>>, %arg2: memref<1x8x32xf32, #tpu.memory_space<vmem>>, %arg3: memref<4x32x8xbf16, #tpu.memory_space<vmem>>, %arg4: memref<4x32x8xbf16, #tpu.memory_space<vmem>>, %arg5: memref<4x32x8xbf16, #tpu.memory_space<vmem>>, %arg6: memref<4x8x32xbf16, #tpu.memory_space<vmem>>, %arg7: memref<4x1x8xf32, #tpu.memory_space<vmem>>, %arg8: memref<4x1x8xf32, #tpu.memory_space<vmem>>, %arg9: memref<4x1x8xf32, #tpu.memory_space<vmem>>, %arg10: memref<1x32xf32, #tpu.memory_space<vmem>>, %arg11: memref<1x32xf32, #tpu.memory_space<vmem>>, %arg12: memref<1x32xf32, #tpu.memory_space<vmem>>, %arg13: memref<1x8x32xf32, #tpu.memory_space<vmem>>) attributes {dimension_semantics = [#tpu.dimension_semantics<parallel>], iteration_bounds = array<i64: 2>, scalar_prefetch = 0 : i64, scratch_operands = 0 : i64, tpu.core_type = #tpu.core_type<tc>, window_params = [{transform_indices = @transform_0, window_bounds = array<i64: 1, 8, 32>}, {transform_indices = @transform_1, window_bounds = array<i64: 1, 8, 32>}, {pipeline_mode = #tpu.pipeline_mode<synchronous>, transform_indices = @transform_2, window_bounds = array<i64: 4, 32, 8>}, {pipeline_mode = #tpu.pipeline_mode<synchronous>, transform_indices = @transform_3, window_bounds = array<i64: 4, 32, 8>}, {pipeline_mode = #tpu.pipeline_mode<synchronous>, transform_indices = @transform_4, window_bounds = array<i64: 4, 32, 8>}, {pipeline_mode = #tpu.pipeline_mode<synchronous>, transform_indices = @transform_5, window_bounds = array<i64: 4, 8, 32>}, {pipeline_mode = #tpu.pipeline_mode<synchronous>, transform_indices = @transform_6, window_bounds = array<i64: 4, 1, 8>}, {pipeline_mode = #tpu.pipeline_mode<synchronous>, transform_indices = @transform_7, window_bounds = array<i64: 4, 1, 8>}, {pipeline_mode = #tpu.pipeline_mode<synchronous>, transform_indices = @transform_8, window_bounds = array<i64: 4, 1, 8>}, {pipeline_mode = #tpu.pipeline_mode<synchronous>, transform_indices = @transform_9, window_bounds = array<i64: 1, 32>}, {pipeline_mode = #tpu.pipeline_mode<synchronous>, transform_indices = @transform_10, window_bounds = array<i64: 1, 32>}, {pipeline_mode = #tpu.pipeline_mode<synchronous>, transform_indices = @transform_11, window_bounds = array<i64: 1, 32>}, {transform_indices = @transform_12, window_bounds = array<i64: 1, 8, 32>}]} {
    %c0 = arith.constant 0 : index
    %c0_0 = arith.constant 0 : index
    %c0_1 = arith.constant 0 : index
    %0 = vector.load %arg1[%c0, %c0_0, %c0_1] : memref<1x8x32xf32, #tpu.memory_space<vmem>>, vector<1x8x32xf32>
    %1 = vector.shape_cast %0 : vector<1x8x32xf32> to vector<8x32xf32>
    %c0_2 = arith.constant 0 : index
    %c0_3 = arith.constant 0 : index
    %c0_4 = arith.constant 0 : index
    %2 = vector.load %arg2[%c0_2, %c0_3, %c0_4] : memref<1x8x32xf32, #tpu.memory_space<vmem>>, vector<1x8x32xf32>
    %3 = vector.shape_cast %2 : vector<1x8x32xf32> to vector<8x32xf32>
    %4 = arith.truncf %1 : vector<8x32xf32> to vector<8x32xbf16>
    %5 = vector.shape_cast %4 : vector<8x32xbf16> to vector<1x8x32xbf16>
    %6 = vector.shape_cast %5 : vector<1x8x32xbf16> to vector<1x8x32xbf16>
    %7 = vector.broadcast %6 : vector<1x8x32xbf16> to vector<4x8x32xbf16>
    %8 = arith.truncf %3 : vector<8x32xf32> to vector<8x32xbf16>
    %9 = vector.shape_cast %8 : vector<8x32xbf16> to vector<1x8x32xbf16>
    %10 = vector.shape_cast %9 : vector<1x8x32xbf16> to vector<1x8x32xbf16>
    %11 = vector.broadcast %10 : vector<1x8x32xbf16> to vector<4x8x32xbf16>
    %c0_5 = arith.constant 0 : index
    %c0_6 = arith.constant 0 : index
    %c0_7 = arith.constant 0 : index
    %12 = vector.load %arg3[%c0_5, %c0_6, %c0_7] : memref<4x32x8xbf16, #tpu.memory_space<vmem>>, vector<4x32x8xbf16>
    "tpu.trace_start"() <{level = 10 : i32, message = "hsd,hde->hse"}> : () -> ()
    %cst = arith.constant dense<0.000000e+00> : vector<4x8x8xf32>
    %13 = tpu.matmul %7, %12, %cst {dimension_numbers = #tpu.dot_dimension_numbers<[2], [1], [1], [2], [0, 0, 0, 1, 1, 2], [0], [0]>} : vector<4x8x32xbf16>, vector<4x32x8xbf16>, vector<4x8x8xf32> -> vector<4x8x8xf32>
    "tpu.trace_stop"() : () -> ()
    %c0_8 = arith.constant 0 : index
    %c0_9 = arith.constant 0 : index
    %c0_10 = arith.constant 0 : index
    %14 = vector.load %arg7[%c0_8, %c0_9, %c0_10] : memref<4x1x8xf32, #tpu.memory_space<vmem>>, vector<4x1x8xf32>
    %15 = vector.broadcast %14 : vector<4x1x8xf32> to vector<4x8x8xf32>
    %16 = arith.addf %13, %15 : vector<4x8x8xf32>
    %c0_11 = arith.constant 0 : index
    %c0_12 = arith.constant 0 : index
    %c0_13 = arith.constant 0 : index
    %17 = vector.load %arg4[%c0_11, %c0_12, %c0_13] : memref<4x32x8xbf16, #tpu.memory_space<vmem>>, vector<4x32x8xbf16>
    "tpu.trace_start"() <{level = 10 : i32, message = "hsd,hde->hse"}> : () -> ()
    %cst_14 = arith.constant dense<0.000000e+00> : vector<4x8x8xf32>
    %18 = tpu.matmul %11, %17, %cst_14 {dimension_numbers = #tpu.dot_dimension_numbers<[2], [1], [1], [2], [0, 0, 0, 1, 1, 2], [0], [0]>} : vector<4x8x32xbf16>, vector<4x32x8xbf16>, vector<4x8x8xf32> -> vector<4x8x8xf32>
    "tpu.trace_stop"() : () -> ()
    %c0_15 = arith.constant 0 : index
    %c0_16 = arith.constant 0 : index
    %c0_17 = arith.constant 0 : index
    %19 = vector.load %arg8[%c0_15, %c0_16, %c0_17] : memref<4x1x8xf32, #tpu.memory_space<vmem>>, vector<4x1x8xf32>
    %20 = vector.broadcast %19 : vector<4x1x8xf32> to vector<4x8x8xf32>
    %21 = arith.addf %18, %20 : vector<4x8x8xf32>
    %c0_18 = arith.constant 0 : index
    %c0_19 = arith.constant 0 : index
    %c0_20 = arith.constant 0 : index
    %22 = vector.load %arg5[%c0_18, %c0_19, %c0_20] : memref<4x32x8xbf16, #tpu.memory_space<vmem>>, vector<4x32x8xbf16>
    "tpu.trace_start"() <{level = 10 : i32, message = "hsd,hde->hse"}> : () -> ()
    %cst_21 = arith.constant dense<0.000000e+00> : vector<4x8x8xf32>
    %23 = tpu.matmul %11, %22, %cst_21 {dimension_numbers = #tpu.dot_dimension_numbers<[2], [1], [1], [2], [0, 0, 0, 1, 1, 2], [0], [0]>} : vector<4x8x32xbf16>, vector<4x32x8xbf16>, vector<4x8x8xf32> -> vector<4x8x8xf32>
    "tpu.trace_stop"() : () -> ()
    %c0_22 = arith.constant 0 : index
    %c0_23 = arith.constant 0 : index
    %c0_24 = arith.constant 0 : index
    %24 = vector.load %arg9[%c0_22, %c0_23, %c0_24] : memref<4x1x8xf32, #tpu.memory_space<vmem>>, vector<4x1x8xf32>
    %25 = vector.broadcast %24 : vector<4x1x8xf32> to vector<4x8x8xf32>
    %26 = arith.addf %23, %25 : vector<4x8x8xf32>
    %27 = arith.truncf %16 : vector<4x8x8xf32> to vector<4x8x8xbf16>
    %28 = arith.truncf %21 : vector<4x8x8xf32> to vector<4x8x8xbf16>
    "tpu.trace_start"() <{level = 10 : i32, message = "hqe,hke->hqk"}> : () -> ()
    %cst_25 = arith.constant dense<0.000000e+00> : vector<4x8x8xf32>
    %29 = tpu.matmul %27, %28, %cst_25 {dimension_numbers = #tpu.dot_dimension_numbers<[2], [2], [1], [1], [0, 0, 0, 1, 1, 1], [0], [0]>} : vector<4x8x8xbf16>, vector<4x8x8xbf16>, vector<4x8x8xf32> -> vector<4x8x8xf32>
    "tpu.trace_stop"() : () -> ()
    %cst_26 = arith.constant 0.353553385 : f32
    %30 = vector.broadcast %cst_26 : f32 to vector<4x8x8xf32>
    %31 = arith.mulf %29, %30 : vector<4x8x8xf32>
    %cst_27 = arith.constant dense<0xFF800000> : vector<4x8xf32>
    %32 = vector.multi_reduction <maximumf>, %31, %cst_27 [2] : vector<4x8x8xf32> to vector<4x8xf32>
    %33 = vector.shape_cast %32 : vector<4x8xf32> to vector<4x8x1xf32>
    %34 = vector.broadcast %33 : vector<4x8x1xf32> to vector<4x8x8xf32>
    %35 = arith.subf %31, %34 : vector<4x8x8xf32>
    %36 = math.exp %35 : vector<4x8x8xf32>
    %cst_28 = arith.constant dense<0.000000e+00> : vector<4x8xf32>
    %37 = vector.multi_reduction <add>, %36, %cst_28 [2] : vector<4x8x8xf32> to vector<4x8xf32>
    %38 = vector.shape_cast %37 : vector<4x8xf32> to vector<4x8x1xf32>
    %39 = vector.broadcast %38 : vector<4x8x1xf32> to vector<4x8x8xf32>
    %40 = arith.divf %36, %39 : vector<4x8x8xf32>
    %41 = arith.truncf %40 : vector<4x8x8xf32> to vector<4x8x8xbf16>
    %42 = arith.truncf %26 : vector<4x8x8xf32> to vector<4x8x8xbf16>
    "tpu.trace_start"() <{level = 10 : i32, message = "hqk,hke->hqe"}> : () -> ()
    %cst_29 = arith.constant dense<0.000000e+00> : vector<4x8x8xf32>
    %43 = tpu.matmul %41, %42, %cst_29 {dimension_numbers = #tpu.dot_dimension_numbers<[2], [1], [1], [2], [0, 0, 0, 1, 1, 2], [0], [0]>} : vector<4x8x8xbf16>, vector<4x8x8xbf16>, vector<4x8x8xf32> -> vector<4x8x8xf32>
    "tpu.trace_stop"() : () -> ()
    %44 = arith.truncf %43 : vector<4x8x8xf32> to vector<4x8x8xbf16>
    %c0_30 = arith.constant 0 : index
    %c0_31 = arith.constant 0 : index
    %c0_32 = arith.constant 0 : index
    %45 = vector.load %arg6[%c0_30, %c0_31, %c0_32] : memref<4x8x32xbf16, #tpu.memory_space<vmem>>, vector<4x8x32xbf16>
    "tpu.trace_start"() <{level = 10 : i32, message = "hqe,hed->hqd"}> : () -> ()
    %cst_33 = arith.constant dense<0.000000e+00> : vector<4x8x32xf32>
    %46 = tpu.matmul %44, %45, %cst_33 {dimension_numbers = #tpu.dot_dimension_numbers<[2], [1], [1], [2], [0, 0, 0, 1, 1, 2], [0], [0]>} : vector<4x8x8xbf16>, vector<4x8x32xbf16>, vector<4x8x32xf32> -> vector<4x8x32xf32>
    "tpu.trace_stop"() : () -> ()
    %cst_34 = arith.constant dense<0.000000e+00> : vector<8x32xf32>
    %47 = vector.multi_reduction <add>, %46, %cst_34 [0] : vector<4x8x32xf32> to vector<8x32xf32>
    %c0_35 = arith.constant 0 : index
    %c0_36 = arith.constant 0 : index
    %48 = vector.load %arg10[%c0_35, %c0_36] : memref<1x32xf32, #tpu.memory_space<vmem>>, vector<1x32xf32>
    %49 = vector.broadcast %48 : vector<1x32xf32> to vector<8x32xf32>
    %50 = arith.addf %47, %49 : vector<8x32xf32>
    %51 = arith.addf %50, %1 : vector<8x32xf32>
    %cst_37 = arith.constant dense<0.000000e+00> : vector<8xf32>
    %52 = vector.multi_reduction <add>, %51, %cst_37 [1] : vector<8x32xf32> to vector<8xf32>
    %53 = vector.shape_cast %52 : vector<8xf32> to vector<8x1xf32>
    %cst_38 = arith.constant 3.200000e+01 : f32
    %54 = vector.broadcast %cst_38 : f32 to vector<8x1xf32>
    %55 = arith.divf %53, %54 : vector<8x1xf32>
    %56 = vector.broadcast %55 : vector<8x1xf32> to vector<8x32xf32>
    %57 = arith.subf %51, %56 : vector<8x32xf32>
    %58 = arith.mulf %57, %57 : vector<8x32xf32>
    %cst_39 = arith.constant dense<0.000000e+00> : vector<8xf32>
    %59 = vector.multi_reduction <add>, %58, %cst_39 [1] : vector<8x32xf32> to vector<8xf32>
    %60 = vector.shape_cast %59 : vector<8xf32> to vector<8x1xf32>
    %cst_40 = arith.constant 3.200000e+01 : f32
    %61 = vector.broadcast %cst_40 : f32 to vector<8x1xf32>
    %62 = arith.divf %60, %61 : vector<8x1xf32>
    %63 = vector.broadcast %55 : vector<8x1xf32> to vector<8x32xf32>
    %64 = arith.subf %51, %63 : vector<8x32xf32>
    %cst_41 = arith.constant 9.99999974E-6 : f32
    %65 = vector.broadcast %cst_41 : f32 to vector<8x1xf32>
    %66 = arith.addf %62, %65 : vector<8x1xf32>
    %67 = math.rsqrt %66 : vector<8x1xf32>
    %68 = vector.broadcast %67 : vector<8x1xf32> to vector<8x32xf32>
    %69 = arith.mulf %64, %68 : vector<8x32xf32>
    %c0_42 = arith.constant 0 : index
    %c0_43 = arith.constant 0 : index
    %70 = vector.load %arg11[%c0_42, %c0_43] : memref<1x32xf32, #tpu.memory_space<vmem>>, vector<1x32xf32>
    %71 = vector.broadcast %70 : vector<1x32xf32> to vector<8x32xf32>
    %72 = arith.mulf %69, %71 : vector<8x32xf32>
    %c0_44 = arith.constant 0 : index
    %c0_45 = arith.constant 0 : index
    %73 = vector.load %arg12[%c0_44, %c0_45] : memref<1x32xf32, #tpu.memory_space<vmem>>, vector<1x32xf32>
    %74 = vector.broadcast %73 : vector<1x32xf32> to vector<8x32xf32>
    %75 = arith.addf %72, %74 : vector<8x32xf32>
    %c0_46 = arith.constant 0 : index
    %c0_47 = arith.constant 0 : index
    %c0_48 = arith.constant 0 : index
    %76 = vector.load %arg13[%c0_46, %c0_47, %c0_48] : memref<1x8x32xf32, #tpu.memory_space<vmem>>, vector<1x8x32xf32>
    %77 = vector.shape_cast %76 : vector<1x8x32xf32> to vector<8x32xf32>
    %78 = vector.shape_cast %75 : vector<8x32xf32> to vector<1x8x32xf32>
    tpu.vector_store %arg13[%c0_46, %c0_47, %c0_48], %78 {strides = array<i32>} : memref<1x8x32xf32, #tpu.memory_space<vmem>>, vector<1x8x32xf32>,
    return
  }
  func.func @transform_0(%arg0: i32) -> (i32, i32, i32) {
    %c0_i32 = arith.constant 0 : i32
    %c0_i32_0 = arith.constant 0 : i32
    %c0_i32_1 = arith.constant 0 : i32
    return %arg0, %c0_i32, %c0_i32_0 : i32, i32, i32
  }
  func.func @transform_1(%arg0: i32) -> (i32, i32, i32) {
    %c0_i32 = arith.constant 0 : i32
    %c0_i32_0 = arith.constant 0 : i32
    %c0_i32_1 = arith.constant 0 : i32
    return %arg0, %c0_i32, %c0_i32_0 : i32, i32, i32
  }
  func.func @transform_2(%arg0: i32) -> (i32, i32, i32) {
    %c0_i32 = arith.constant 0 : i32
    %c0_i32_0 = arith.constant 0 : i32
    %c0_i32_1 = arith.constant 0 : i32
    %c0_i32_2 = arith.constant 0 : i32
    return %c0_i32, %c0_i32_0, %c0_i32_1 : i32, i32, i32
  }
  func.func @transform_3(%arg0: i32) -> (i32, i32, i32) {
    %c0_i32 = arith.constant 0 : i32
    %c0_i32_0 = arith.constant 0 : i32
    %c0_i32_1 = arith.constant 0 : i32
    %c0_i32_2 = arith.constant 0 : i32
    return %c0_i32, %c0_i32_0, %c0_i32_1 : i32, i32, i32
  }
  func.func @transform_4(%arg0: i32) -> (i32, i32, i32) {
    %c0_i32 = arith.constant 0 : i32
    %c0_i32_0 = arith.constant 0 : i32
    %c0_i32_1 = arith.constant 0 : i32
    %c0_i32_2 = arith.constant 0 : i32
    return %c0_i32, %c0_i32_0, %c0_i32_1 : i32, i32, i32
  }
  func.func @transform_5(%arg0: i32) -> (i32, i32, i32) {
    %c0_i32 = arith.constant 0 : i32
    %c0_i32_0 = arith.constant 0 : i32
    %c0_i32_1 = arith.constant 0 : i32
    %c0_i32_2 = arith.constant 0 : i32
    return %c0_i32, %c0_i32_0, %c0_i32_1 : i32, i32, i32
  }
  func.func @transform_6(%arg0: i32) -> (i32, i32, i32) {
    %c0_i32 = arith.constant 0 : i32
    %c0_i32_0 = arith.constant 0 : i32
    %c0_i32_1 = arith.constant 0 : i32
    %c0_i32_2 = arith.constant 0 : i32
    return %c0_i32, %c0_i32_0, %c0_i32_1 : i32, i32, i32
  }
  func.func @transform_7(%arg0: i32) -> (i32, i32, i32) {
    %c0_i32 = arith.constant 0 : i32
    %c0_i32_0 = arith.constant 0 : i32
    %c0_i32_1 = arith.constant 0 : i32
    %c0_i32_2 = arith.constant 0 : i32
    return %c0_i32, %c0_i32_0, %c0_i32_1 : i32, i32, i32
  }
  func.func @transform_8(%arg0: i32) -> (i32, i32, i32) {
    %c0_i32 = arith.constant 0 : i32
    %c0_i32_0 = arith.constant 0 : i32
    %c0_i32_1 = arith.constant 0 : i32
    %c0_i32_2 = arith.constant 0 : i32
    return %c0_i32, %c0_i32_0, %c0_i32_1 : i32, i32, i32
  }
  func.func @transform_9(%arg0: i32) -> (i32, i32) {
    %c0_i32 = arith.constant 0 : i32
    %c0_i32_0 = arith.constant 0 : i32
    %c0_i32_1 = arith.constant 0 : i32
    return %c0_i32, %c0_i32_0 : i32, i32
  }
  func.func @transform_10(%arg0: i32) -> (i32, i32) {
    %c0_i32 = arith.constant 0 : i32
    %c0_i32_0 = arith.constant 0 : i32
    %c0_i32_1 = arith.constant 0 : i32
    return %c0_i32, %c0_i32_0 : i32, i32
  }
  func.func @transform_11(%arg0: i32) -> (i32, i32) {
    %c0_i32 = arith.constant 0 : i32
    %c0_i32_0 = arith.constant 0 : i32
    %c0_i32_1 = arith.constant 0 : i32
    return %c0_i32, %c0_i32_0 : i32, i32
  }
  func.func @transform_12(%arg0: i32) -> (i32, i32, i32) {
    %c0_i32 = arith.constant 0 : i32
    %c0_i32_0 = arith.constant 0 : i32
    %c0_i32_1 = arith.constant 0 : i32
    return %arg0, %c0_i32, %c0_i32_0 : i32, i32, i32
  }
}

module attributes {stable_mosaic.version = 11 : i64} {
  func.func @_linear_logsoftmax_kernel(%arg0: i32, %arg1: memref<16x32xf32, #tpu.memory_space<vmem>>, %arg2: memref<32x50xbf16, #tpu.memory_space<vmem>>, %arg3: memref<1x50xf32, #tpu.memory_space<vmem>>, %arg4: memref<16x50xf32, #tpu.memory_space<vmem>>) attributes {dimension_semantics = [#tpu.dimension_semantics<parallel>], iteration_bounds = array<i64: 1>, scalar_prefetch = 0 : i64, scratch_operands = 0 : i64, tpu.core_type = #tpu.core_type<tc>, window_params = [{transform_indices = @transform_0, window_bounds = array<i64: 16, 32>}, {pipeline_mode = #tpu.pipeline_mode<synchronous>, transform_indices = @transform_1, window_bounds = array<i64: 32, 50>}, {pipeline_mode = #tpu.pipeline_mode<synchronous>, transform_indices = @transform_2, window_bounds = array<i64: 1, 50>}, {transform_indices = @transform_3, window_bounds = array<i64: 16, 50>}]} {
    %c0 = arith.constant 0 : index
    %c0_0 = arith.constant 0 : index
    %0 = vector.load %arg1[%c0, %c0_0] : memref<16x32xf32, #tpu.memory_space<vmem>>, vector<16x32xf32>
    %1 = arith.truncf %0 : vector<16x32xf32> to vector<16x32xbf16>
    %c0_1 = arith.constant 0 : index
    %c0_2 = arith.constant 0 : index
    %2 = vector.load %arg2[%c0_1, %c0_2] : memref<32x50xbf16, #tpu.memory_space<vmem>>, vector<32x50xbf16>
    %cst = arith.constant dense<0.000000e+00> : vector<16x50xf32>
    %3 = tpu.matmul %1, %2, %cst {dimension_numbers = #tpu.dot_dimension_numbers<[1], [0], [0], [1], [0, 0, 1, 1], [], []>} : vector<16x32xbf16>, vector<32x50xbf16>, vector<16x50xf32> -> vector<16x50xf32>
    %c0_3 = arith.constant 0 : index
    %c0_4 = arith.constant 0 : index
    %4 = vector.load %arg3[%c0_3, %c0_4] : memref<1x50xf32, #tpu.memory_space<vmem>>, vector<1x50xf32>
    %5 = vector.broadcast %4 : vector<1x50xf32> to vector<16x50xf32>
    %6 = arith.addf %3, %5 : vector<16x50xf32>
    %cst_5 = arith.constant dense<0xFF800000> : vector<16xf32>
    %7 = vector.multi_reduction <maximumf>, %6, %cst_5 [1] : vector<16x50xf32> to vector<16xf32>
    %8 = vector.shape_cast %7 : vector<16xf32> to vector<16x1xf32>
    %9 = vector.broadcast %8 : vector<16x1xf32> to vector<16x50xf32>
    %10 = arith.subf %6, %9 : vector<16x50xf32>
    %11 = math.exp %10 : vector<16x50xf32>
    %cst_6 = arith.constant dense<0.000000e+00> : vector<16xf32>
    %12 = vector.multi_reduction <add>, %11, %cst_6 [1] : vector<16x50xf32> to vector<16xf32>
    %13 = vector.shape_cast %12 : vector<16xf32> to vector<16x1xf32>
    %14 = math.log %13 : vector<16x1xf32>
    %15 = arith.addf %14, %8 : vector<16x1xf32>
    %16 = vector.broadcast %15 : vector<16x1xf32> to vector<16x50xf32>
    %17 = arith.subf %6, %16 : vector<16x50xf32>
    %c0_7 = arith.constant 0 : index
    %c0_8 = arith.constant 0 : index
    %18 = vector.load %arg4[%c0_7, %c0_8] : memref<16x50xf32, #tpu.memory_space<vmem>>, vector<16x50xf32>
    tpu.vector_store %arg4[%c0_7, %c0_8], %17 {strides = array<i32>} : memref<16x50xf32, #tpu.memory_space<vmem>>, vector<16x50xf32>,
    return
  }
  func.func @transform_0(%arg0: i32) -> (i32, i32) {
    %c0_i32 = arith.constant 0 : i32
    %c0_i32_0 = arith.constant 0 : i32
    return %arg0, %c0_i32 : i32, i32
  }
  func.func @transform_1(%arg0: i32) -> (i32, i32) {
    %c0_i32 = arith.constant 0 : i32
    %c0_i32_0 = arith.constant 0 : i32
    %c0_i32_1 = arith.constant 0 : i32
    return %c0_i32, %c0_i32_0 : i32, i32
  }
  func.func @transform_2(%arg0: i32) -> (i32, i32) {
    %c0_i32 = arith.constant 0 : i32
    %c0_i32_0 = arith.constant 0 : i32
    %c0_i32_1 = arith.constant 0 : i32
    return %c0_i32, %c0_i32_0 : i32, i32
  }
  func.func @transform_3(%arg0: i32) -> (i32, i32) {
    %c0_i32 = arith.constant 0 : i32
    %c0_i32_0 = arith.constant 0 : i32
    return %arg0, %c0_i32 : i32, i32
  }
}

</mosaic_0001>

<bundles_post_ra>
// kernel: custom_transformer_forward.12
= control target key start
LH: loop header
LB: loop body
LE: loop exit
PB: predicated region body
PF: predicated region fallthrough
CT: control target
= control target key end

     0   :  { %v290_v0 = vmov 0.0   ;;  %vm291_vm0 = vmmov 0   ;;  %vm53_vm1 = vcmask 261120   ;;  %vm140_vm2 = vcmask 523264   ;;  %s381_s1 = inlined_call_operand.vmem [shape: bf16[32,64], index: 1, kind: input, shape index: {}]   ;;  %s382_s0 = inlined_call_operand.vmem [shape: f32[16,32], index: 0, kind: input, shape index: {}]   ;;  %s383_s3 = inlined_call_operand.vmem [shape: bf16[64,32], index: 3, kind: input, shape index: {}]   ;;  %s384_s2 = inlined_call_operand.vmem [shape: f32[1,64], index: 2, kind: input, shape index: {}]   ;;  %s385_s4 = inlined_call_operand.vmem [shape: f32[1,32], index: 4, kind: input, shape index: {}]   ;;  %s386_s5 = inlined_call_operand.vmem [shape: f32[1,32], index: 5, kind: input, shape index: {}]   ;;  %s387_s6 = inlined_call_operand.vmem [shape: f32[1,32], index: 6, kind: input, shape index: {}]   ;;  %s388_s7 = inlined_call_operand.vmem [shape: f32[16,32], index: 7, kind: output, shape index: {}]  }
   0x1   :  { %258 = vmatprep.subr.bf16.mxu0 %v290_v0  ;;  %v280_v1 = vld [vmem:[%s381_s1 + $0x8] sm:$0xff]   ;;  %262 = vmatprep.mubr.msk.bf16.mxu0 %vm291_vm0, %v290_v0  ;;  %v281_v2 = vld [vmem:[%s381_s1] sm:$0xff]   ;;  %v282_v5 = vld [vmem:[%s383_s3 + $0x18] sm:$0xff]  }
   0x2   :  { %266 = vmatprep.subr.bf16.mxu1 %v290_v0  ;;  %274 = vmatprep.mubr.msk.bf16.mxu1 %vm291_vm0, %v290_v0  ;;  %v27_v3 = vld [vmem:[%s382_s0] sm:$0xff]  ;;  %v28_v4 = vld [vmem:[%s382_s0 + $0x8] sm:$0xff]  ;;  %v283_v7 = vld [vmem:[%s383_s3 + $0x10] sm:$0xff]  }
   0x3   :  { %259 = vmatpush3.bf16.msra.mxu0 %v280_v1  ;;  %v29_v6 = vpack.c.bf16 %v28_v4, %v27_v3  ;;  %267 = vmatpush3.bf16.msra.mxu1 %v282_v5  ;;  %v284_v8 = vld [vmem:[%s383_s3 + $0x8] sm:$0xff]   ;;  %v285_v9 = vld [vmem:[%s383_s3] sm:$0xff]  }
   0x4   :  { %260 = vmatprep.subr.bf16.mxu0 %v290_v0  ;;  %268 = vmatprep.subr.bf16.mxu1 %v290_v0  ;;  %v238_v10 = vld [vmem:[%s384_s2] ss:$0 sm:$0xff] }
   0x5   :  { %v242_v20 = vld [vmem:[%s385_s4] ss:$0 sm:$0xff] }
   0x6   :  { %v248_v48 = vld [vmem:[%s386_s5] ss:$0 sm:$0xff] }
   0x7   :  { %261 = vmatpush3.bf16.msra.mxu0 %v281_v2  ;;  %269 = vmatpush3.bf16.msra.mxu1 %v283_v7  ;;  %v249_v50 = vld [vmem:[%s387_s6] ss:$0 sm:$0xff] }
   0x8   :  { %270 = vmatprep.subr.bf16.mxu1 %v290_v0 }
   0xa   :  { %263 = vmatmul.mubr.msk.bf16.vlgmr.msra.gmra.mxu0 %vm53_vm1, %v29_v6 }
   0xb   :  { %271 = vmatpush3.bf16.msra.mxu1 %v284_v8 }
   0xc   :  { %272 = vmatprep.subr.bf16.mxu1 %v290_v0 }
   0xf   :  { %273 = vmatpush3.bf16.msra.mxu1 %v285_v9 }
  0xca   :  { %v91_v11 = vpop.f32.mrf.mxu0 }
  0xcb   :  { %v92_v13 = vadd.f32 %v238_v10, %v91_v11 }
  0xcc   :  { %v264_v12 = vpop.f32.mrf.mxu0 }
  0xcd   :  { %v98_v17 = vmax.f32 %v92_v13, 0.0 }
  0xce   :  { %v94_v14 = vpop.f32.mrf.mxu0 }
  0xcf   :  { %v95_v15 = vadd.f32 %v238_v10, %v94_v14 }
  0xd0   :  { %v265_v16 = vpop.f32.mrf.mxu0 }
  0xd1   :  { %v99_v18 = vmax.f32 %v95_v15, 0.0 }
  0xd3   :  { %v100_v19 = vpack.c.bf16 %v99_v18, %v98_v17 }
  0xd5   :  { %275 = vmatmul.mubr.msk.bf16.vlgmr.msra.gmra.mxu1 %vm140_vm2, %v100_v19 }
 0x195   :  { %v178_v21 = vpop.f32.mrf.mxu1 }
 0x196   :  { %v179_v22 = vadd.f32 %v242_v20, %v178_v21 }
 0x197   :  { %v276_v23 = vpop.f32.mrf.mxu1 }
 0x198   :  { %v185_v24 = vadd.f32 %v179_v22, %v27_v3 }
 0x199   :  { %v181_v25 = vpop.f32.mrf.mxu1 }
 0x19a   :  { %v182_v26 = vadd.f32 %v242_v20, %v181_v25  ;;  %v187_v27 = vsel %vm53_vm1, %v185_v24, 0.0 }
 0x19b   :  { %188 = vadd.xlane.f32.xlu0 %v187_v27  ;;  %v277_v28 = vpop.f32.mrf.mxu1 }
 0x19c   :  { %v186_v29 = vadd.f32 %v182_v26, %v28_v4 }
 0x19e   :  { %v190_v30 = vsel %vm53_vm1, %v186_v29, 0.0 }
 0x19f   :  { %191 = vadd.xlane.f32.xlu0 %v190_v30 }
 0x224   :  { %v189_v31 = vpop.xlane.xlu0 %188 }
 0x225   :  { %v194_v32 = vmul.f32 0.03125, %v189_v31 }
 0x227   :  { %v196_v33 = vsub.f32 %v185_v24, %v194_v32 }
 0x228   :  { %v192_v34 = vpop.xlane.xlu0 %191 }
 0x229   :  { %v195_v35 = vmul.f32 0.03125, %v192_v34  ;;  %v198_v36 = vmul.f32 %v196_v33, %v196_v33 }
 0x22b   :  { %v197_v37 = vsub.f32 %v186_v29, %v195_v35  ;;  %v200_v38 = vsel %vm53_vm1, %v198_v36, 0.0 }
 0x22c   :  { %201 = vadd.xlane.f32.xlu1 %v200_v38 }
 0x22d   :  { %v199_v39 = vmul.f32 %v197_v37, %v197_v37 }
 0x22f   :  { %v203_v40 = vsel %vm53_vm1, %v199_v39, 0.0 }
 0x230   :  { %204 = vadd.xlane.f32.xlu1 %v203_v40 }
 0x2b5   :  { %v202_v41 = vpop.xlane.xlu1 %201 }
 0x2b6   :  { %v206_v42 = vmul.f32 0.03125, %v202_v41 }
 0x2b8   :  { %v208_v43 = vadd.f32 1e-05, %v206_v42 }
 0x2b9   :  { %v205_v44 = vpop.xlane.xlu1 %204 }
 0x2ba   :  { %286 = vrsqrt.f32 %v208_v43  ;;  %v207_v45 = vmul.f32 0.03125, %v205_v44 }
 0x2bc   :  { %v209_v46 = vadd.f32 1e-05, %v207_v45 }
 0x2be   :  { %288 = vrsqrt.f32 %v209_v46 }
 0x2c7   :  { %v287_v47 = vpop.eup %286 }
 0x2c8   :  { %v212_v49 = vmul.f32 %v287_v47, %v196_v33 }
 0x2ca   :  { %v221_v51 = vmul.f32 %v248_v48, %v212_v49 }
 0x2cb   :  { %v289_v52 = vpop.eup %288 }
 0x2cc   :  { %v230_v53 = vadd.f32 %v249_v50, %v221_v51  ;;  %v213_v54 = vmul.f32 %v289_v52, %v197_v37 }
 0x2ce   :  { %232 = vst.msk [vmem:[%s388_s7] sm:$0xff] %vm53_vm1, %v230_v53  ;;  %v222_v55 = vmul.f32 %v248_v48, %v213_v54 }
 0x2d0   :  { %v231_v56 = vadd.f32 %v249_v50, %v222_v55 }
 0x2d2   :  { %233 = vst.msk [vmem:[%s388_s7 + $0x8] sm:$0xff] %vm53_vm1, %v231_v56 }

// kernel: custom_transformer_forward.21
= control target key start
LH: loop header
LB: loop body
LE: loop exit
PB: predicated region body
PF: predicated region fallthrough
CT: control target
= control target key end

     0   :  { %v184_v1 = vmov 0.0   ;;  %vm185_vm0 = vmmov 0   ;;  %s233_s0 = inlined_call_operand.vmem [shape: f32[16,32], index: 0, kind: input, shape index: {}]   ;;  %s234_s1 = inlined_call_operand.vmem [shape: bf16[32,50], index: 1, kind: input, shape index: {}]   ;;  %s235_s2 = inlined_call_operand.vmem [shape: f32[1,50], index: 2, kind: input, shape index: {}]   ;;  %s236_s3 = inlined_call_operand.hbm [shape: f32[16,50], index: 3, kind: output, shape index: {}]  }
   0x1   :  { %v152_v0 = vld [vmem:[%s234_s1 + $0x8] sm:$0xff]   ;;  %139 = vmatprep.subr.bf16.mxu0 %v184_v1  ;;  %v153_v2 = vld [vmem:[%s234_s1] sm:$0xff]   ;;  %143 = vmatprep.mubr.msk.bf16.mxu0 %vm185_vm0, %v184_v1 }
   0x2   :  { %140 = vmatpush3.bf16.msra.mxu0 %v152_v0  ;;  %v16_v3 = vld [vmem:[%s233_s0] sm:$0xff]  ;;  %v17_v4 = vld [vmem:[%s233_s0 + $0x8] sm:$0xff] }
   0x3   :  { %141 = vmatprep.subr.bf16.mxu0 %v184_v1 }
   0x4   :  { %8 = vsyncpa [#allocation3], 0  ;;  %v18_v5 = vpack.c.bf16 %v17_v4, %v16_v3  ;;  %vm42_vm1 = vcmask 261120   ;;  %v132_v6 = vld [vmem:[%s235_s2] ss:$0 sm:$0xff]  ;;  %vm87_vm2 = vcmask 408576  }
   0x5   :  { %s186_s0 = smov [#allocation2]  }
   0x6   :  { %142 = vmatpush3.bf16.msra.mxu0 %v153_v2  ;;  %s121_s1 = sshll.u32 %s186_s0, 4  ;;  %s122_s1 = int_to_ptr.vmem [resolvable:$true] %s121_s1 }
   0x7   :  { %s162_s2 = scalar_lea.vmem %s122_s1, 256  ;;  %p167_p1 = scmp.lt.s32.totalorder %s122_s1, %s122_s1 }
   0x8   :  { %p163_p0 = scmp.ne.s32.totalorder %s122_s1, %s162_s2  ;;  %p168_p2 = scmp.lt.s32.totalorder %s162_s2, %s162_s2 }
   0x9   :  { %144 = vmatmul.mubr.msk.bf16.vlgmr.msra.gmra.mxu0 %vm42_vm1, %v18_v5 }
   0xa   :  { %p169_p3 = por %p168_p2, %p167_p1 }
   0xc   :  { %p170_p4 = pnand %p169_p3, %p163_p0 }
  0xc9   :  { %v80_v7 = vpop.f32.mrf.mxu0 }
  0xca   :  { %v81_v8 = vadd.f32 %v132_v6, %v80_v7 }
  0xcb   :  { %v145_v9 = vpop.f32.mrf.mxu0 }
  0xcc   :  { %v88_v10 = vsel %vm87_vm2, %v81_v8, -inf }
  0xcd   :  { %89 = vmax.xlane.f32.xlu0 %v88_v10  ;;  %v83_v11 = vpop.f32.mrf.mxu0 }
  0xce   :  { %v84_v12 = vadd.f32 %v132_v6, %v83_v11 }
  0xcf   :  { %v146_v13 = vpop.f32.mrf.mxu0 }
  0xd0   :  { %v91_v14 = vsel %vm87_vm2, %v84_v12, -inf }
  0xd1   :  { %92 = vmax.xlane.f32.xlu0 %v91_v14 }
 0x156   :  { %v90_v15 = vpop.xlane.xlu0 %89 }
 0x157   :  { %v94_v16 = vsub.f32 %v81_v8, %v90_v15 }
 0x159   :  { %v96_v17 = vmul.f32 1.442695, %v94_v16 }
 0x15a   :  { %v93_v18 = vpop.xlane.xlu0 %92 }
 0x15b   :  { %154 = vpow2.f32 %v96_v17  ;;  %v95_v19 = vsub.f32 %v84_v12, %v93_v18 }
 0x15d   :  { %v98_v20 = vmul.f32 1.442695, %v95_v19 }
 0x15f   :  { %156 = vpow2.f32 %v98_v20 }
 0x168   :  { %v155_v21 = vpop.eup %154 }
 0x169   :  { %v100_v22 = vsel %vm87_vm2, %v155_v21, 0.0 }
 0x16a   :  { %101 = vadd.xlane.f32.xlu1 %v100_v22 }
 0x16c   :  { %v157_v23 = vpop.eup %156 }
 0x16d   :  { %v103_v24 = vsel %vm87_vm2, %v157_v23, 0.0 }
 0x16e   :  { %104 = vadd.xlane.f32.xlu1 %v103_v24 }
 0x1f3   :  { %v102_v25 = vpop.xlane.xlu1 %101 }
 0x1f4   :  { %158 = vlog2.f32 %v102_v25 }
 0x1f7   :  { %v105_v26 = vpop.xlane.xlu1 %104 }
 0x1f8   :  { %160 = vlog2.f32 %v105_v26 }
 0x201   :  { %v159_v27 = vpop.eup %158 }
 0x202   :  { %v107_v28 = vmul.f32 0.6931472, %v159_v27 }
 0x204   :  { %v110_v29 = vadd.f32 %v107_v28, %v90_v15 }
 0x205   :  { %v161_v30 = vpop.eup %160 }
 0x206   :  { %v112_v31 = vsub.f32 %v81_v8, %v110_v29  ;;  %v109_v32 = vmul.f32 0.6931472, %v161_v30 }
 0x208   :  { %114 = vst.msk [vmem:[#allocation2] sm:$0xff] %vm87_vm2, %v112_v31  ;;  %v111_v33 = vadd.f32 %v109_v32, %v93_v18 }
 0x20a   :  { %v113_v34 = vsub.f32 %v84_v12, %v111_v33 }
 0x20c   :  { %115 = vst.msk [vmem:[#allocation2 + $0x8] sm:$0xff] %vm87_vm2, %v113_v34 }
 0x20d   :  { %173 = shalt.err (!%p170_p4)
}
 0x20e   :  { %s187_s22 = smov 128   ;;  %s188_s23 = smov 8  }
 0x20f   :  { %127 = dma.vmem_to_hbm [thread:$0]  %s122_s1, 256, %s236_s3, [#allocation3], %s187_s22, %s187_s22, %s188_s23  }
 0x210   :  { %182 = dma.done.wait [#allocation3], 256  }
 0x211   :  { %183 = vsyncadd [#allocation3], 4294967040 }
 0x212   :  { %131 = vsyncpa [#allocation3], 1 }

// kernel: custom_transformer_forward.11
= control target key start
LH: loop header
LB: loop body
LE: loop exit
PB: predicated region body
PF: predicated region fallthrough
CT: control target
= control target key end

     0   :  { %s2360_s21 = smov 0   ;;  %s2660_s0 = inlined_call_operand.vmem [shape: f32[2,8,32], index: 0, kind: input, shape index: {}, may-alias: {0,1}]   ;;  %s2661_s1 = inlined_call_operand.vmem [shape: f32[2,8,32], index: 1, kind: input, shape index: {}, may-alias: {0,1}]   ;;  %s2662_s2 = inlined_call_operand.vmem [shape: bf16[4,32,8], index: 2, kind: input, shape index: {}]   ;;  %s2663_s3 = inlined_call_operand.vmem [shape: bf16[4,32,8], index: 3, kind: input, shape index: {}]   ;;  %s2664_s4 = inlined_call_operand.vmem [shape: bf16[4,32,8], index: 4, kind: input, shape index: {}]   ;;  %s2665_s5 = inlined_call_operand.vmem [shape: bf16[4,8,32], index: 5, kind: input, shape index: {}]   ;;  %s2666_s6 = inlined_call_operand.vmem [shape: f32[4,1,8], index: 6, kind: input, shape index: {}]   ;;  %s2667_s7 = inlined_call_operand.vmem [shape: f32[4,1,8], index: 7, kind: input, shape index: {}]   ;;  %s2668_s8 = inlined_call_operand.vmem [shape: f32[4,1,8], index: 8, kind: input, shape index: {}]   ;;  %s2669_s9 = inlined_call_operand.vmem [shape: f32[1,32], index: 9, kind: input, shape index: {}]   ;;  %s2670_s10 = inlined_call_operand.vmem [shape: f32[1,32], index: 10, kind: input, shape index: {}]   ;;  %s2671_s11 = inlined_call_operand.vmem [shape: f32[1,32], index: 11, kind: input, shape index: {}]   ;;  %s2672_s12 = inlined_call_operand.vmem [shape: f32[2,8,32], index: 12, kind: output, shape index: {}]  }
   0x1 LB: > { %s1932_s22 = sadd.s32 4294967295, %s2291_s21   ;;  %p1936_p0 = scmp.ge.s32.totalorder %s2291_s21, 1  ;;  %s2291_s21 = sphi %s2360_s21, %s22_s21  }
   0x2   : > { %p370_p1 = scmp.lt.s32.totalorder %s2291_s21, 3 }
   0x4   : > { %p371_p2 = pnand %p1936_p0, %p370_p1 }
   0x5   : > { %p414_p3 = scmp.lt.s32.totalorder (!%p371_p2), %s1932_s22, 1 }
   0x6   : > { %374 = sbr.rel (%p371_p2) target bundleno = 1466 (0x5ba), region = 68 }
   0xb   : > { %v2243_v0 = vld [vmem:[%s2662_s2 + $0x8] sm:$0xff]   ;;  %v2293_v1 = vmov 0.0   ;;  %v2244_v2 = vld [vmem:[%s2662_s2 + $0x18] sm:$0xff]   ;;  %v2245_v3 = vld [vmem:[%s2662_s2] sm:$0xff]   ;;  %vm2294_vm0 = vmmov 0   ;;  %s2674_s22 = smov (!%p414_p3, %s1932_s22), 1 }
   0xc   : > { %2065 = vmatprep.subr.bf16.mxu0 %v2293_v1  ;;  %2073 = vmatprep.subr.bf16.mxu1 %v2293_v1  ;;  %v2246_v4 = vld [vmem:[%s2662_s2 + $0x10] sm:$0xff]   ;;  %s2388_s13 = sshll.u32 %s2674_s22, 3  ;;  %v2247_v5 = vld [vmem:[%s2662_s2 + $0x28] sm:$0xff]   ;;  %vm487_vm1 = vcmask 261120   ;;  %v2248_v7 = vld [vmem:[%s2662_s2 + $0x38] sm:$0xff]   ;;  %vm1202_vm2 = vcmask 64512  }
   0xd   : > { %2066 = vmatpush3.bf16.msra.mxu0 %v2243_v0  ;;  %2069 = vmatprep.mubr.msk.bf16.mxu0 %vm2294_vm0, %v2293_v1  ;;  %s417_s16 = scalar_lea.vmem %s2660_s0, %s2388_s13  ;;  %v2249_v9 = vld [vmem:[%s2662_s2 + $0x20] sm:$0xff]   ;;  %v2250_v10 = vld [vmem:[%s2662_s2 + $0x30] sm:$0xff]   ;;  %s421_s28 = scalar_lea.vmem %s2661_s1, %s2388_s13  ;;  %v2251_v11 = vld [vmem:[%s2663_s3 + $0x8] sm:$0xff]   ;;  %vm1446_vm3 = vcmask 1043456  }
   0xe   : > { %2074 = vmatpush3.bf16.msra.mxu1 %v2244_v2  ;;  %2067 = vmatprep.subr.bf16.mxu0 %v2293_v1  ;;  %v2398_v6 = vld [vmem:[%s417_s16] sm:$0xff]  ;;  %v2252_v12 = vld [vmem:[%s2663_s3 + $0x18] sm:$0xff]   ;;  %v2254_v15 = vld [vmem:[%s2663_s3 + $0x10] sm:$0xff]   ;;  %s425_s20 = scalar_lea.vmem %s2672_s12, %s2388_s13 }
   0xf   : > { %2075 = vmatprep.subr.bf16.mxu1 %v2293_v1  ;;  %2077 = vmatprep.mubr.msk.bf16.mxu1 %vm2294_vm0, %v2293_v1  ;;  %v429_v8 = vpack.c.bf16 %v2398_v6, %v2398_v6  ;;  %v428_v13 = vld [vmem:[%s421_s28] sm:$0xff]  ;;  %v2255_v17 = vld [vmem:[%s2663_s3 + $0x28] sm:$0xff]   ;;  %v2256_v18 = vld [vmem:[%s2663_s3 + $0x38] sm:$0xff]  }
  0x10   : > { %v2253_v14 = vld [vmem:[%s2663_s3] sm:$0xff]   ;;  %v430_v16 = vpack.c.bf16 %v428_v13, %v428_v13  ;;  %v2258_v20 = vld [vmem:[%s2663_s3 + $0x30] sm:$0xff]   ;;  %v2259_v21 = vld [vmem:[%s2664_s4 + $0x8] sm:$0xff]  }
  0x11   : > { %2068 = vmatpush3.bf16.msra.mxu0 %v2245_v3  ;;  %v2257_v19 = vld [vmem:[%s2663_s3 + $0x20] sm:$0xff]   ;;  %v2261_v23 = vld [vmem:[%s2664_s4 + $0x18] sm:$0xff]   ;;  %v2262_v24 = vld [vmem:[%s2664_s4 + $0x10] sm:$0xff]  }
  0x12   : > { %2076 = vmatpush3.bf16.msra.mxu1 %v2246_v4  ;;  %2081 = vmatprep.subr.bf16.mxu0 %v2293_v1  ;;  %v2260_v22 = vld [vmem:[%s2664_s4] sm:$0xff]   ;;  %v2263_v25 = vld [vmem:[%s2664_s4 + $0x28] sm:$0xff]   ;;  %v2265_v27 = vld [vmem:[%s2664_s4 + $0x38] sm:$0xff]  }
  0x13   : > { %2089 = vmatprep.subr.bf16.mxu1 %v2293_v1  ;;  %v2264_v26 = vld [vmem:[%s2664_s4 + $0x20] sm:$0xff]   ;;  %v2266_v28 = vld [vmem:[%s2664_s4 + $0x30] sm:$0xff]  }
  0x14   : > { %2070 = vmatmul.mubr.msk.bf16.vlgmr.msra.gmra.mxu0 %vm487_vm1, %v429_v8  ;;  %v1956_v45 = vld [vmem:[%s2667_s7] ss:$0 sm:$0xff]  ;;  %v1957_v46 = vld [vmem:[%s2667_s7 + $0x1] ss:$0 sm:$0xff]  ;;  %v1958_v63 = vld [vmem:[%s2667_s7 + $0x2] ss:$0 sm:$0xff] }
  0x15   : > { %2078 = vmatmul.mubr.msk.bf16.vlgmr.msra.gmra.mxu1 %vm487_vm1, %v429_v8  ;;  %2082 = vmatpush3.bf16.msra.mxu0 %v2247_v5  ;;  %v1940_v55 = vld [vmem:[%s2666_s6] ss:$0 sm:$0xff]  ;;  %v1941_v56 = vld [vmem:[%s2666_s6 + $0x1] ss:$0 sm:$0xff]  ;;  %v1959_v0 = vld [vmem:[%s2667_s7 + $0x3] ss:$0 sm:$0xff] }
  0x16   : > { %2090 = vmatpush3.bf16.msra.mxu1 %v2248_v7  ;;  %2083 = vmatprep.subr.bf16.mxu0 %v2293_v1 }
  0x17   : > { %2091 = vmatprep.subr.bf16.mxu1 %v2293_v1  ;;  %2085 = vmatprep.mubr.msk.bf16.mxu0 %vm2294_vm0, %v2293_v1 }
  0x18   : > { %2093 = vmatprep.mubr.msk.bf16.mxu1 %vm2294_vm0, %v2293_v1 }
  0x19   : > { %2084 = vmatpush3.bf16.msra.mxu0 %v2249_v9 }
  0x1a   : > { %2092 = vmatpush3.bf16.msra.mxu1 %v2250_v10  ;;  %2097 = vmatprep.subr.bf16.mxu0 %v2293_v1 }
  0x1b   : > { %2105 = vmatprep.subr.bf16.mxu1 %v2293_v1 }
  0x1c   : > { %2086 = vmatmul.mubr.msk.bf16.vlgmr.msra.gmra.mxu0 %vm487_vm1, %v429_v8 }
  0x1d   : > { %2094 = vmatmul.mubr.msk.bf16.vlgmr.msra.gmra.mxu1 %vm487_vm1, %v429_v8  ;;  %2098 = vmatpush3.bf16.msra.mxu0 %v2251_v11 }
  0x1e   : > { %2106 = vmatpush3.bf16.msra.mxu1 %v2252_v12  ;;  %2099 = vmatprep.subr.bf16.mxu0 %v2293_v1 }
  0x1f   : > { %2107 = vmatprep.subr.bf16.mxu1 %v2293_v1  ;;  %2101 = vmatprep.mubr.msk.bf16.mxu0 %vm2294_vm0, %v2293_v1 }
  0x20   : > { %2109 = vmatprep.mubr.msk.bf16.mxu1 %vm2294_vm0, %v2293_v1 }
  0x21   : > { %2100 = vmatpush3.bf16.msra.mxu0 %v2253_v14 }
  0x22   : > { %2108 = vmatpush3.bf16.msra.mxu1 %v2254_v15  ;;  %2113 = vmatprep.subr.bf16.mxu0 %v2293_v1  ;;  %v1942_v15 = vld [vmem:[%s2666_s6 + $0x2] ss:$0 sm:$0xff] }
  0x23   : > { %2121 = vmatprep.subr.bf16.mxu1 %v2293_v1 }
  0x24   : > { %2102 = vmatmul.mubr.msk.bf16.vlgmr.msra.gmra.mxu0 %vm487_vm1, %v430_v16 }
  0x25   : > { %2110 = vmatmul.mubr.msk.bf16.vlgmr.msra.gmra.mxu1 %vm487_vm1, %v430_v16  ;;  %2114 = vmatpush3.bf16.msra.mxu0 %v2255_v17 }
  0x26   : > { %2122 = vmatpush3.bf16.msra.mxu1 %v2256_v18  ;;  %2115 = vmatprep.subr.bf16.mxu0 %v2293_v1 }
  0x27   : > { %2123 = vmatprep.subr.bf16.mxu1 %v2293_v1  ;;  %2117 = vmatprep.mubr.msk.bf16.mxu0 %vm2294_vm0, %v2293_v1 }
  0x28   : > { %2125 = vmatprep.mubr.msk.bf16.mxu1 %vm2294_vm0, %v2293_v1 }
  0x29   : > { %2116 = vmatpush3.bf16.msra.mxu0 %v2257_v19 }
  0x2a   : > { %2124 = vmatpush3.bf16.msra.mxu1 %v2258_v20  ;;  %2129 = vmatprep.subr.bf16.mxu0 %v2293_v1 }
  0x2b   : > { %2137 = vmatprep.subr.bf16.mxu1 %v2293_v1 }
  0x2c   : > { %2118 = vmatmul.mubr.msk.bf16.vlgmr.msra.gmra.mxu0 %vm487_vm1, %v430_v16 }
  0x2d   : > { %2126 = vmatmul.mubr.msk.bf16.vlgmr.msra.gmra.mxu1 %vm487_vm1, %v430_v16  ;;  %2133 = vmatprep.mubr.msk.bf16.mxu0 %vm2294_vm0, %v2293_v1 }
  0x2e   : > { %2141 = vmatprep.mubr.msk.bf16.mxu1 %vm2294_vm0, %v2293_v1  ;;  %2130 = vmatpush3.bf16.msra.mxu0 %v2259_v21 }
  0x2f   : > { %2131 = vmatprep.subr.bf16.mxu0 %v2293_v1  ;;  %2138 = vmatpush3.bf16.msra.mxu1 %v2261_v23 }
  0x30   : > { %2139 = vmatprep.subr.bf16.mxu1 %v2293_v1 }
  0x32   : > { %2132 = vmatpush3.bf16.msra.mxu0 %v2260_v22 }
  0x33   : > { %2145 = vmatprep.subr.bf16.mxu0 %v2293_v1  ;;  %2140 = vmatpush3.bf16.msra.mxu1 %v2262_v24 }
  0x34   : > { %2153 = vmatprep.subr.bf16.mxu1 %v2293_v1 }
  0x35   : > { %2134 = vmatmul.mubr.msk.bf16.vlgmr.msra.gmra.mxu0 %vm487_vm1, %v430_v16 }
  0x36   : > { %2146 = vmatpush3.bf16.msra.mxu0 %v2263_v25  ;;  %2149 = vmatprep.mubr.msk.bf16.mxu0 %vm2294_vm0, %v2293_v1 }
  0x37   : > { %2147 = vmatprep.subr.bf16.mxu0 %v2293_v1  ;;  %2142 = vmatmul.mubr.msk.bf16.vlgmr.msra.gmra.mxu1 %vm487_vm1, %v430_v16 }
  0x38   : > { %2154 = vmatpush3.bf16.msra.mxu1 %v2265_v27  ;;  %2157 = vmatprep.mubr.msk.bf16.mxu1 %vm2294_vm0, %v2293_v1  ;;  %v1972_v27 = vld [vmem:[%s2668_s8] ss:$0 sm:$0xff] }
  0x39   : > { %2155 = vmatprep.subr.bf16.mxu1 %v2293_v1 }
  0x3a   : > { %2148 = vmatpush3.bf16.msra.mxu0 %v2264_v26 }
  0x3b   : > { %2161 = vmatprep.subr.bf16.mxu0 %v2293_v1 }
  0x3c   : > { %2156 = vmatpush3.bf16.msra.mxu1 %v2266_v28 }
  0x3d   : > { %2150 = vmatmul.mubr.msk.bf16.vlgmr.msra.gmra.mxu0 %vm487_vm1, %v430_v16  ;;  %2167 = vmatprep.subr.bf16.mxu1 %v2293_v1 }
  0x3e   : > { %2163 = vmatprep.mubr.msk.bf16.mxu0 %vm2294_vm0, %v2293_v1 }
  0x3f   : > { %2158 = vmatmul.mubr.msk.bf16.vlgmr.msra.gmra.mxu1 %vm487_vm1, %v430_v16  ;;  %v1943_v16 = vld [vmem:[%s2666_s6 + $0x3] ss:$0 sm:$0xff] }
  0x40   : > { %2169 = vmatprep.mubr.msk.bf16.mxu1 %vm2294_vm0, %v2293_v1 }
  0xd4   : > { %v525_v29 = vpop.f32.mrf.mxu0 }
  0xd5   : > { %v577_v30 = vpop.f32.mrf.mxu1  ;;  %v526_v2 = vadd.f32 %v1940_v55, %v525_v29 }
  0xd6   : > { %v2071_v31 = vpop.f32.mrf.mxu0  ;;  %v578_v3 = vadd.f32 %v1941_v56, %v577_v30 }
  0xd7   : > { %v2079_v32 = vpop.f32.mrf.mxu1  ;;  %v1194_v11 = vpack.c.bf16 %v526_v2, %v526_v2  ;;  %v1973_v31 = vld [vmem:[%s2668_s8 + $0x1] ss:$0 sm:$0xff] }
  0xd8   : > { %v528_v33 = vpop.f32.mrf.mxu0  ;;  %v1195_v12 = vpack.c.bf16 %v578_v3, %v578_v3 }
  0xd9   : > { %v580_v34 = vpop.f32.mrf.mxu1 }
  0xda   : > { %v2072_v35 = vpop.f32.mrf.mxu0 }
  0xdb   : > { %v2080_v36 = vpop.f32.mrf.mxu1 }
  0xdc   : > { %v629_v37 = vpop.f32.mrf.mxu0 }
  0xdd   : > { %v681_v38 = vpop.f32.mrf.mxu1  ;;  %v630_v23 = vadd.f32 %v1942_v15, %v629_v37 }
  0xde   : > { %v2087_v39 = vpop.f32.mrf.mxu0  ;;  %v682_v24 = vadd.f32 %v1943_v16, %v681_v38 }
  0xdf   : > { %v2095_v40 = vpop.f32.mrf.mxu1  ;;  %v1196_v25 = vpack.c.bf16 %v630_v23, %v630_v23 }
  0xe0   : > { %v632_v41 = vpop.f32.mrf.mxu0  ;;  %v1197_v26 = vpack.c.bf16 %v682_v24, %v682_v24 }
  0xe1   : > { %v684_v42 = vpop.f32.mrf.mxu1 }
  0xe2   : > { %v2088_v43 = vpop.f32.mrf.mxu0 }
  0xe3   : > { %v2096_v44 = vpop.f32.mrf.mxu1 }
  0xe4   : > { %v780_v47 = vpop.f32.mrf.mxu0 }
  0xe5   : > { %v832_v48 = vpop.f32.mrf.mxu1  ;;  %v781_v49 = vadd.f32 %v1956_v45, %v780_v47 }
  0xe6   : > { %v833_v50 = vadd.f32 %v1957_v46, %v832_v48  ;;  %v2103_v51 = vpop.f32.mrf.mxu0 }
  0xe7   : > { %v2111_v52 = vpop.f32.mrf.mxu1  ;;  %v1198_v53 = vpack.c.bf16 %v781_v49, %v781_v49 }
  0xe8   : > { %v1199_v54 = vpack.c.bf16 %v833_v50, %v833_v50  ;;  %v783_v57 = vpop.f32.mrf.mxu0 }
  0xe9   : > { %v835_v58 = vpop.f32.mrf.mxu1  ;;  %v1207_v59 = vsel %vm1202_vm2, %v1198_v53, 0 }
  0xea   : > { %v1253_v60 = vsel %vm1202_vm2, %v1199_v54, 0  ;;  %v2104_v61 = vpop.f32.mrf.mxu0  ;;  %2162 = vmatpush3.bf16.xpose.msra.mxu0 %v1207_v59 }
  0xeb   : > { %v2112_v62 = vpop.f32.mrf.mxu1  ;;  %2168 = vmatpush3.bf16.xpose.msra.mxu1 %v1253_v60  ;;  %2173 = vmatprep.subr.bf16.mxu0 %v2293_v1 }
  0xec   : > { %2179 = vmatprep.subr.bf16.mxu1 %v2293_v1  ;;  %v884_v4 = vpop.f32.mrf.mxu0 }
  0xed   : > { %v936_v5 = vpop.f32.mrf.mxu1  ;;  %v885_v7 = vadd.f32 %v1958_v63, %v884_v4 }
  0xee   : > { %v937_v8 = vadd.f32 %v1959_v0, %v936_v5  ;;  %v2119_v9 = vpop.f32.mrf.mxu0 }
  0xef   : > { %v2127_v10 = vpop.f32.mrf.mxu1  ;;  %v1200_v13 = vpack.c.bf16 %v885_v7, %v885_v7 }
  0xf0   : > { %v1201_v14 = vpack.c.bf16 %v937_v8, %v937_v8  ;;  %v887_v17 = vpop.f32.mrf.mxu0 }
  0xf1   : > { %v939_v18 = vpop.f32.mrf.mxu1  ;;  %v1299_v19 = vsel %vm1202_vm2, %v1200_v13, 0  ;;  %2164 = vmatmul.mubr.msk.bf16.vlgmr.msra.gmra.mxu0 %vm1202_vm2, %v1194_v11 }
  0xf2   : > { %v1345_v20 = vsel %vm1202_vm2, %v1201_v14, 0  ;;  %2170 = vmatmul.mubr.msk.bf16.vlgmr.msra.gmra.mxu1 %vm1202_vm2, %v1195_v12  ;;  %v2120_v21 = vpop.f32.mrf.mxu0  ;;  %2174 = vmatpush3.bf16.xpose.msra.mxu0 %v1299_v19 }
  0xf3   : > { %v2128_v22 = vpop.f32.mrf.mxu1  ;;  %2180 = vmatpush3.bf16.xpose.msra.mxu1 %v1345_v20  ;;  %2175 = vmatprep.mubr.msk.bf16.mxu0 %vm2294_vm0, %v2293_v1 }
  0xf4   : > { %2181 = vmatprep.mubr.msk.bf16.mxu1 %vm2294_vm0, %v2293_v1  ;;  %2185 = vmatprep.subr.bf16.mxu0 %v2293_v1 }
  0xf5   : > { %2191 = vmatprep.subr.bf16.mxu1 %v2293_v1  ;;  %v1032_v28 = vpop.f32.mrf.mxu0 }
  0xf6   : > { %v1033_v29 = vadd.f32 %v1972_v27, %v1032_v28 }
  0xf7   : > { %v2135_v30 = vpop.f32.mrf.mxu0  ;;  %v1084_v34 = vpop.f32.mrf.mxu1 }
  0xf8   : > { %v1439_v32 = vpack.c.bf16 %v1033_v29, %v1033_v29  ;;  %v1085_v36 = vadd.f32 %v1973_v31, %v1084_v34 }
  0xf9   : > { %2176 = vmatmul.mubr.msk.bf16.vlgmr.msra.gmra.mxu0 %vm1202_vm2, %v1196_v25  ;;  %v1035_v33 = vpop.f32.mrf.mxu0  ;;  %v2143_v38 = vpop.f32.mrf.mxu1 }
  0xfa   : > { %2182 = vmatmul.mubr.msk.bf16.vlgmr.msra.gmra.mxu1 %vm1202_vm2, %v1197_v26  ;;  %2187 = vmatprep.mubr.msk.bf16.mxu0 %vm2294_vm0, %v2293_v1  ;;  %v1448_v35 = vsel %vm1446_vm3, %v1439_v32, 0  ;;  %v1440_v39 = vpack.c.bf16 %v1085_v36, %v1085_v36  ;;  %v1975_v38 = vld [vmem:[%s2668_s8 + $0x3] ss:$0 sm:$0xff] }
  0xfb   : > { %2193 = vmatprep.mubr.msk.bf16.mxu1 %vm2294_vm0, %v2293_v1  ;;  %v2136_v37 = vpop.f32.mrf.mxu0  ;;  %2186 = vmatpush3.bf16.msra.mxu0 %v1448_v35  ;;  %v1087_v40 = vpop.f32.mrf.mxu1  ;;  %v1974_v35 = vld [vmem:[%s2668_s8 + $0x2] ss:$0 sm:$0xff] }
  0xfc   : > { %2197 = vmatprep.subr.bf16.mxu0 %v2293_v1  ;;  %v1494_v42 = vsel %vm1446_vm3, %v1440_v39, 0 }
  0xfd   : > { %v2572_v41 = vpop.f32.mrf.mxu0  ;;  %v2144_v43 = vpop.f32.mrf.mxu1  ;;  %2192 = vmatpush3.bf16.msra.mxu1 %v1494_v42 }
  0xfe   : > { %2203 = vmatprep.subr.bf16.mxu1 %v2293_v1  ;;  %v1137_v37 = vadd.f32 %v1974_v35, %v2572_v41 }
  0xff   : > { %v2151_v44 = vpop.f32.mrf.mxu0  ;;  %v2576_v46 = vpop.f32.mrf.mxu1 }
 0x100   : > { %v1441_v42 = vpack.c.bf16 %v1137_v37, %v1137_v37  ;;  %v1189_v43 = vadd.f32 %v1975_v38, %v2576_v46  ;;  %v1632_v46 = vld [vmem:[%s2665_s5] sm:$0xf] }
 0x101   : > { %v1139_v45 = vpop.f32.mrf.mxu0  ;;  %v2159_v48 = vpop.f32.mrf.mxu1 }
 0x102   : > { %v1540_v48 = vsel %vm1446_vm3, %v1441_v42, 0 }
 0x103   : > { %v2152_v47 = vpop.f32.mrf.mxu0  ;;  %v1191_v49 = vpop.f32.mrf.mxu1 }
 0x104   : > { %v1442_v49 = vpack.c.bf16 %v1189_v43, %v1189_v43 }
 0x105   : > { %v2160_v50 = vpop.f32.mrf.mxu1 }
 0x1b1   : > { %v1243_v51 = vpop.f32.mrf.mxu0 }
 0x1b2   : > { %v1289_v52 = vpop.f32.mrf.mxu1  ;;  %v1387_v53 = vmul.f32 0.35355338, %v1243_v51 }
 0x1b3   : > { %v2165_v54 = vpop.f32.mrf.mxu0  ;;  %v1388_v56 = vmul.f32 0.35355338, %v1289_v52  ;;  %v1586_v52 = vsel %vm1446_vm3, %v1442_v49, 0 }
 0x1b4   : > { %v2171_v55 = vpop.f32.mrf.mxu1  ;;  %v1391_v57 = vsel %vm1202_vm2, %v1387_v53, -inf }
 0x1b5   : > { %1392 = vmax.xlane.f32.xlu0 %v1391_v57  ;;  %v1246_v59 = vpop.f32.mrf.mxu0  ;;  %v1394_v62 = vsel %vm1202_vm2, %v1388_v56, -inf  ;;  %v1640_v55 = vsel %vm1446_vm3, %v1632_v46, 0 }
 0x1b6   : > { %v1292_v58 = vpop.f32.mrf.mxu1  ;;  %v1633_v59 = vld [vmem:[%s2665_s5 + $0x4] sm:$0xf] }
 0x1b7   : > { %v2166_v60 = vpop.f32.mrf.mxu0 }
 0x1b8   : > { %v2172_v61 = vpop.f32.mrf.mxu1  ;;  %v1686_v60 = vsel %vm1446_vm3, %v1633_v59, 0  ;;  %v2002_v59 = vld [vmem:[%s2671_s11] ss:$0 sm:$0xff] }
 0x1b9   : > { %1395 = vmax.xlane.f32.xlu0 %v1394_v62  ;;  %v1335_v0 = vpop.f32.mrf.mxu0  ;;  %v1634_v61 = vld [vmem:[%s2665_s5 + $0x8] sm:$0xf] }
 0x1ba   : > { %v1381_v63 = vpop.f32.mrf.mxu1  ;;  %v1389_v2 = vmul.f32 0.35355338, %v1335_v0  ;;  %v1732_v0 = vsel %vm1446_vm3, %v1634_v61, 0 }
 0x1bb   : > { %v2177_v3 = vpop.f32.mrf.mxu0  ;;  %v1390_v5 = vmul.f32 0.35355338, %v1381_v63 }
 0x1bc   : > { %v2183_v4 = vpop.f32.mrf.mxu1  ;;  %v1397_v7 = vsel %vm1202_vm2, %v1389_v2, -inf  ;;  %v1635_v3 = vld [vmem:[%s2665_s5 + $0xc] sm:$0xf] }
 0x1bd   : > { %1398 = vmax.xlane.f32.xlu1 %v1397_v7  ;;  %v1338_v9 = vpop.f32.mrf.mxu0  ;;  %v1400_v12 = vsel %vm1202_vm2, %v1390_v5, -inf }
 0x1be   : > { %v1384_v8 = vpop.f32.mrf.mxu1 }
 0x1bf   : > { %v2178_v10 = vpop.f32.mrf.mxu0  ;;  %v1778_v8 = vsel %vm1446_vm3, %v1635_v3, 0 }
 0x1c0   : > { %v2184_v11 = vpop.f32.mrf.mxu1 }
 0x1c1   : > { %1401 = vmax.xlane.f32.xlu1 %v1400_v12 }
 0x23e   : > { %v1393_v13 = vpop.xlane.xlu0 %1392 }
 0x23f   : > { %v1403_v14 = vsub.f32 %v1387_v53, %v1393_v13 }
 0x241   : > { %v1407_v15 = vmul.f32 1.442695, %v1403_v14 }
 0x242   : > { %v1396_v16 = vpop.xlane.xlu0 %1395 }
 0x243   : > { %2267 = vpow2.f32 %v1407_v15  ;;  %v1404_v17 = vsub.f32 %v1388_v56, %v1396_v16 }
 0x245   : > { %v1409_v18 = vmul.f32 1.442695, %v1404_v17 }
 0x246   : > { %v1399_v19 = vpop.xlane.xlu1 %1398 }
 0x247   : > { %2269 = vpow2.f32 %v1409_v18  ;;  %v1405_v20 = vsub.f32 %v1389_v2, %v1399_v19 }
 0x249   : > { %v1411_v21 = vmul.f32 1.442695, %v1405_v20 }
 0x24a   : > { %v1402_v22 = vpop.xlane.xlu1 %1401 }
 0x24b   : > { %2271 = vpow2.f32 %v1411_v21  ;;  %v1406_v23 = vsub.f32 %v1390_v5, %v1402_v22 }
 0x24d   : > { %v1413_v24 = vmul.f32 1.442695, %v1406_v23 }
 0x24f   : > { %2273 = vpow2.f32 %v1413_v24 }
 0x250   : > { %v2268_v25 = vpop.eup %2267 }
 0x251   : > { %v1415_v26 = vsel %vm1202_vm2, %v2268_v25, 0.0 }
 0x252   : > { %1416 = vadd.xlane.f32.xlu0 %v1415_v26 }
 0x254   : > { %v2270_v27 = vpop.eup %2269 }
 0x255   : > { %v1418_v28 = vsel %vm1202_vm2, %v2270_v27, 0.0 }
 0x256   : > { %1419 = vadd.xlane.f32.xlu1 %v1418_v28 }
 0x258   : > { %v2272_v29 = vpop.eup %2271 }
 0x259   : > { %v1421_v30 = vsel %vm1202_vm2, %v2272_v29, 0.0 }
 0x25a   : > { %1422 = vadd.xlane.f32.xlu0 %v1421_v30 }
 0x25c   : > { %v2274_v31 = vpop.eup %2273 }
 0x25d   : > { %v1424_v32 = vsel %vm1202_vm2, %v2274_v31, 0.0 }
 0x25e   : > { %1425 = vadd.xlane.f32.xlu1 %v1424_v32 }
 0x2db   : > { %v1417_v33 = vpop.xlane.xlu0 %1416 }
 0x2dc   : > { %2275 = vrcp.f32 %v1417_v33 }
 0x2df   : > { %v1420_v34 = vpop.xlane.xlu1 %1419 }
 0x2e0   : > { %2277 = vrcp.f32 %v1420_v34 }
 0x2e3   : > { %v1423_v36 = vpop.xlane.xlu0 %1422 }
 0x2e4   : > { %2279 = vrcp.f32 %v1423_v36 }
 0x2e7   : > { %v1426_v39 = vpop.xlane.xlu1 %1425 }
 0x2e8   : > { %2281 = vrcp.f32 %v1426_v39 }
 0x2e9   : > { %v2276_v40 = vpop.eup %2275 }
 0x2ea   : > { %v1428_v44 = vmul.f32 %v2276_v40, %v2268_v25  ;;  %v2000_v40 = vld [vmem:[%s2669_s9] ss:$0 sm:$0xff] }
 0x2ec   : > { %v1435_v45 = vpack.c.bf16 %v1428_v44, %v1428_v44 }
 0x2ed   : > { %v2278_v47 = vpop.eup %2277 }
 0x2ee   : > { %2188 = vmatmul.mubr.msk.bf16.vlgmr.msra.gmra.mxu0 %vm1202_vm2, %v1435_v45  ;;  %v1430_v50 = vmul.f32 %v2278_v47, %v2270_v27 }
 0x2ef   : > { %2198 = vmatpush3.bf16.msra.mxu0 %v1540_v48  ;;  %2199 = vmatprep.mubr.msk.bf16.mxu0 %vm2294_vm0, %v2293_v1 }
 0x2f0   : > { %v1436_v41 = vpack.c.bf16 %v1430_v50, %v1430_v50  ;;  %2209 = vmatprep.subr.bf16.mxu0 %v2293_v1 }
 0x2f1   : > { %v2280_v51 = vpop.eup %2279 }
 0x2f2   : > { %2194 = vmatmul.mubr.msk.bf16.vlgmr.msra.gmra.mxu1 %vm1202_vm2, %v1436_v41  ;;  %v1432_v53 = vmul.f32 %v2280_v51, %v2272_v29 }
 0x2f3   : > { %2204 = vmatpush3.bf16.msra.mxu1 %v1586_v52  ;;  %2205 = vmatprep.mubr.msk.bf16.mxu1 %vm2294_vm0, %v2293_v1 }
 0x2f4   : > { %v1437_v54 = vpack.c.bf16 %v1432_v53, %v1432_v53  ;;  %2215 = vmatprep.subr.bf16.mxu1 %v2293_v1 }
 0x2f5   : > { %v2282_v56 = vpop.eup %2281 }
 0x2f6   : > { %2200 = vmatmul.mubr.msk.bf16.vlgmr.msra.gmra.mxu0 %vm1202_vm2, %v1437_v54  ;;  %v1434_v57 = vmul.f32 %v2282_v56, %v2274_v31 }
 0x2f7   : > { %2210 = vmatpush3.bf16.msra.mxu0 %v1640_v55  ;;  %2211 = vmatprep.mubr.msk.bf16.mxu0 %vm2294_vm0, %v2293_v1 }
 0x2f8   : > { %v1438_v58 = vpack.c.bf16 %v1434_v57, %v1434_v57  ;;  %2221 = vmatprep.subr.bf16.mxu0 %v2293_v1 }
 0x2fa   : > { %2206 = vmatmul.mubr.msk.bf16.vlgmr.msra.gmra.mxu1 %vm1202_vm2, %v1438_v58 }
 0x2fb   : > { %2217 = vmatprep.mubr.msk.bf16.mxu1 %vm2294_vm0, %v2293_v1  ;;  %2216 = vmatpush3.bf16.msra.mxu1 %v1686_v60 }
 0x2fc   : > { %2227 = vmatprep.subr.bf16.mxu1 %v2293_v1 }
 0x3ae   : > { %v1484_v62 = vpop.f32.mrf.mxu0 }
 0x3af   : > { %v1628_v63 = vpack.c.bf16 %v1484_v62, %v1484_v62 }
 0x3b0   : > { %v2189_v2 = vpop.f32.mrf.mxu0 }
 0x3b1   : > { %2212 = vmatmul.mubr.msk.bf16.vlgmr.msra.gmra.mxu0 %vm1202_vm2, %v1628_v63 }
 0x3b2   : > { %v1487_v4 = vpop.f32.mrf.mxu0  ;;  %v1530_v5 = vpop.f32.mrf.mxu1  ;;  %2222 = vmatpush3.bf16.msra.mxu0 %v1732_v0  ;;  %2223 = vmatprep.mubr.msk.bf16.mxu0 %vm2294_vm0, %v2293_v1 }
 0x3b3   : > { %v1629_v7 = vpack.c.bf16 %v1530_v5, %v1530_v5 }
 0x3b4   : > { %v2190_v9 = vpop.f32.mrf.mxu0  ;;  %v2195_v10 = vpop.f32.mrf.mxu1 }
 0x3b5   : > { %2218 = vmatmul.mubr.msk.bf16.vlgmr.msra.gmra.mxu1 %vm1202_vm2, %v1629_v7 }
 0x3b6   : > { %v1533_v11 = vpop.f32.mrf.mxu1  ;;  %v1576_v12 = vpop.f32.mrf.mxu0  ;;  %2228 = vmatpush3.bf16.msra.mxu1 %v1778_v8  ;;  %2229 = vmatprep.mubr.msk.bf16.mxu1 %vm2294_vm0, %v2293_v1 }
 0x3b7   : > { %v1630_v13 = vpack.c.bf16 %v1576_v12, %v1576_v12 }
 0x3b8   : > { %v2196_v14 = vpop.f32.mrf.mxu1  ;;  %v2201_v15 = vpop.f32.mrf.mxu0 }
 0x3b9   : > { %2224 = vmatmul.mubr.msk.bf16.vlgmr.msra.gmra.mxu0 %vm1202_vm2, %v1630_v13 }
 0x3ba   : > { %v1579_v16 = vpop.f32.mrf.mxu0  ;;  %v1622_v17 = vpop.f32.mrf.mxu1 }
 0x3bb   : > { %v1631_v18 = vpack.c.bf16 %v1622_v17, %v1622_v17 }
 0x3bc   : > { %v2202_v19 = vpop.f32.mrf.mxu0  ;;  %v2207_v20 = vpop.f32.mrf.mxu1 }
 0x3bd   : > { %2230 = vmatmul.mubr.msk.bf16.vlgmr.msra.gmra.mxu1 %vm1202_vm2, %v1631_v18 }
 0x3be   : > { %v1625_v21 = vpop.f32.mrf.mxu1 }
 0x3c0   : > { %v2208_v22 = vpop.f32.mrf.mxu1 }
 0x471   : > { %v1676_v23 = vpop.f32.mrf.mxu0 }
 0x472   : > { %v1820_v31 = vsel %vm487_vm1, %v1676_v23, 0.0 }
 0x473   : > { %v2213_v24 = vpop.f32.mrf.mxu0 }
 0x475   : > { %v1679_v25 = vpop.f32.mrf.mxu0  ;;  %v1722_v26 = vpop.f32.mrf.mxu1 }
 0x476   : > { %v1821_v28 = vsel %vm487_vm1, %v1722_v26, 0.0 }
 0x477   : > { %v2214_v27 = vpop.f32.mrf.mxu0  ;;  %v2219_v1 = vpop.f32.mrf.mxu1  ;;  %v1822_v33 = vadd.f32 %v1821_v28, %v1820_v31 }
 0x479   : > { %v1725_v29 = vpop.f32.mrf.mxu1  ;;  %v1768_v30 = vpop.f32.mrf.mxu0 }
 0x47a   : > { %v1823_v32 = vsel %vm487_vm1, %v1768_v30, 0.0 }
 0x47b   : > { %v2220_v34 = vpop.f32.mrf.mxu1  ;;  %v2225_v35 = vpop.f32.mrf.mxu0  ;;  %v1824_v36 = vadd.f32 %v1823_v32, %v1822_v33 }
 0x47d   : > { %v1771_v37 = vpop.f32.mrf.mxu0  ;;  %v1814_v38 = vpop.f32.mrf.mxu1 }
 0x47e   : > { %v1825_v39 = vsel %vm487_vm1, %v1814_v38, 0.0 }
 0x47f   : > { %v1826_v42 = vadd.f32 %v1825_v39, %v1824_v36  ;;  %v2226_v43 = vpop.f32.mrf.mxu0  ;;  %v2231_v44 = vpop.f32.mrf.mxu1 }
 0x481   : > { %v1834_v45 = vadd.f32 %v2000_v40, %v1826_v42  ;;  %v1817_v47 = vpop.f32.mrf.mxu1 }
 0x483   : > { %v2232_v48 = vpop.f32.mrf.mxu1  ;;  %v1835_v49 = vadd.f32 %v1834_v45, %v2398_v6  ;;  %v2001_v6 = vld [vmem:[%s2670_s10] ss:$0 sm:$0xff] }
 0x485   : > { %v1836_v50 = vsel %vm487_vm1, %v1835_v49, 0.0 }
 0x486   : > { %1837 = vadd.xlane.f32.xlu0 %v1836_v50 }
 0x50f   : > { %v1838_v41 = vpop.xlane.xlu0 %1837 }
 0x510   : > { %v1840_v51 = vmul.f32 0.03125, %v1838_v41 }
 0x512   : > { %v1841_v46 = vsub.f32 %v1835_v49, %v1840_v51 }
 0x514   : > { %v1842_v52 = vmul.f32 %v1841_v46, %v1841_v46 }
 0x516   : > { %v1843_v53 = vsel %vm487_vm1, %v1842_v52, 0.0 }
 0x517   : > { %1844 = vadd.xlane.f32.xlu1 %v1843_v53 }
 0x5a0   : > { %v1845_v54 = vpop.xlane.xlu1 %1844 }
 0x5a1   : > { %v1846_v55 = vmul.f32 0.03125, %v1845_v54 }
 0x5a3   : > { %v1847_v56 = vadd.f32 1e-05, %v1846_v55 }
 0x5a5   : > { %2283 = vrsqrt.f32 %v1847_v56 }
 0x5b2   : > { %v2284_v57 = vpop.eup %2283 }
 0x5b3   : > { %v1849_v58 = vmul.f32 %v2284_v57, %v1841_v46 }
 0x5b5   : > { %v1857_v60 = vmul.f32 %v2001_v6, %v1849_v58 }
 0x5b7   : > { %v1865_v61 = vadd.f32 %v2002_v59, %v1857_v60 }
 0x5b9   : > { %1866 = vst.msk [vmem:[%s425_s20] sm:$0xff] %vm487_vm1, %v1865_v61 }
 0x5ba PF: > { %s22_s21 = sadd.s32 1, %s2291_s21  }
 0x5bb   : > { %p19_p4 = scmp.ge.s32.totalorder %s22_s21, 4  }
 0x5bd   :  { %21 = sbr.rel (!%p19_p4) target bundleno = 1 (0x1), region = 101 }

// kernel: custom_transformer_forward.15
= control target key start
LH: loop header
LB: loop body
LE: loop exit
PB: predicated region body
PF: predicated region fallthrough
CT: control target
= control target key end

     0   :  { %s2371_s21 = smov 0   ;;  %s2675_s0 = inlined_call_operand.vmem [shape: f32[2,8,32], index: 0, kind: input, shape index: {}, may-alias: {0,1}]   ;;  %s2676_s1 = inlined_call_operand.vmem [shape: f32[2,8,32], index: 1, kind: input, shape index: {}, may-alias: {0,1}]   ;;  %s2677_s2 = inlined_call_operand.vmem [shape: bf16[4,32,8], index: 2, kind: input, shape index: {}]   ;;  %s2678_s3 = inlined_call_operand.vmem [shape: bf16[4,32,8], index: 3, kind: input, shape index: {}]   ;;  %s2679_s4 = inlined_call_operand.vmem [shape: bf16[4,32,8], index: 4, kind: input, shape index: {}]   ;;  %s2680_s5 = inlined_call_operand.vmem [shape: bf16[4,8,32], index: 5, kind: input, shape index: {}]   ;;  %s2681_s6 = inlined_call_operand.vmem [shape: f32[4,1,8], index: 6, kind: input, shape index: {}]   ;;  %s2682_s7 = inlined_call_operand.vmem [shape: f32[4,1,8], index: 7, kind: input, shape index: {}]   ;;  %s2683_s8 = inlined_call_operand.vmem [shape: f32[4,1,8], index: 8, kind: input, shape index: {}]   ;;  %s2684_s9 = inlined_call_operand.vmem [shape: f32[1,32], index: 9, kind: input, shape index: {}]   ;;  %s2685_s10 = inlined_call_operand.vmem [shape: f32[1,32], index: 10, kind: input, shape index: {}]   ;;  %s2686_s11 = inlined_call_operand.vmem [shape: f32[1,32], index: 11, kind: input, shape index: {}]   ;;  %s2687_s12 = inlined_call_operand.vmem [shape: f32[2,8,32], index: 12, kind: output, shape index: {}]  }
   0x1 LB: > { %s1943_s22 = sadd.s32 4294967295, %s2302_s21   ;;  %p1947_p0 = scmp.ge.s32.totalorder %s2302_s21, 1  ;;  %s2302_s21 = sphi %s2371_s21, %s22_s21  }
   0x2   : > { %p370_p1 = scmp.lt.s32.totalorder %s2302_s21, 3 }
   0x4   : > { %p371_p2 = pnand %p1947_p0, %p370_p1 }
   0x5   : > { %p414_p3 = scmp.lt.s32.totalorder (!%p371_p2), %s1943_s22, 1 }
   0x6   : > { %374 = sbr.rel (%p371_p2) target bundleno = 1467 (0x5bb), region = 68 }
   0xb   : > { %v2254_v0 = vld [vmem:[%s2677_s2 + $0x8] sm:$0xff]   ;;  %v2304_v1 = vmov 0.0   ;;  %v2255_v2 = vld [vmem:[%s2677_s2 + $0x18] sm:$0xff]   ;;  %v2256_v3 = vld [vmem:[%s2677_s2] sm:$0xff]   ;;  %vm2305_vm0 = vmmov 0   ;;  %s2689_s22 = smov (!%p414_p3, %s1943_s22), 1 }
   0xc   : > { %2076 = vmatprep.subr.bf16.mxu0 %v2304_v1  ;;  %2084 = vmatprep.subr.bf16.mxu1 %v2304_v1  ;;  %v2257_v4 = vld [vmem:[%s2677_s2 + $0x10] sm:$0xff]   ;;  %s2399_s13 = sshll.u32 %s2689_s22, 3  ;;  %v2258_v5 = vld [vmem:[%s2677_s2 + $0x28] sm:$0xff]   ;;  %vm487_vm1 = vcmask 261120   ;;  %v2259_v7 = vld [vmem:[%s2677_s2 + $0x38] sm:$0xff]   ;;  %vm1202_vm2 = vcmask 64512  }
   0xd   : > { %2077 = vmatpush3.bf16.msra.mxu0 %v2254_v0  ;;  %2080 = vmatprep.mubr.msk.bf16.mxu0 %vm2305_vm0, %v2304_v1  ;;  %s417_s16 = scalar_lea.vmem %s2675_s0, %s2399_s13  ;;  %v2260_v9 = vld [vmem:[%s2677_s2 + $0x20] sm:$0xff]   ;;  %v2261_v10 = vld [vmem:[%s2677_s2 + $0x30] sm:$0xff]   ;;  %s421_s28 = scalar_lea.vmem %s2676_s1, %s2399_s13  ;;  %v2262_v11 = vld [vmem:[%s2678_s3 + $0x8] sm:$0xff]   ;;  %vm1457_vm3 = vcmask 1043456  }
   0xe   : > { %2085 = vmatpush3.bf16.msra.mxu1 %v2255_v2  ;;  %2078 = vmatprep.subr.bf16.mxu0 %v2304_v1  ;;  %v2409_v6 = vld [vmem:[%s417_s16] sm:$0xff]  ;;  %v2263_v12 = vld [vmem:[%s2678_s3 + $0x18] sm:$0xff]   ;;  %v2265_v15 = vld [vmem:[%s2678_s3 + $0x10] sm:$0xff]   ;;  %s425_s20 = scalar_lea.vmem %s2687_s12, %s2399_s13 }
   0xf   : > { %2086 = vmatprep.subr.bf16.mxu1 %v2304_v1  ;;  %2088 = vmatprep.mubr.msk.bf16.mxu1 %vm2305_vm0, %v2304_v1  ;;  %v429_v8 = vpack.c.bf16 %v2409_v6, %v2409_v6  ;;  %v428_v13 = vld [vmem:[%s421_s28] sm:$0xff]  ;;  %v2266_v17 = vld [vmem:[%s2678_s3 + $0x28] sm:$0xff]   ;;  %v2267_v18 = vld [vmem:[%s2678_s3 + $0x38] sm:$0xff]  }
  0x10   : > { %v2264_v14 = vld [vmem:[%s2678_s3] sm:$0xff]   ;;  %v430_v16 = vpack.c.bf16 %v428_v13, %v428_v13  ;;  %v2269_v20 = vld [vmem:[%s2678_s3 + $0x30] sm:$0xff]   ;;  %v2270_v21 = vld [vmem:[%s2679_s4 + $0x8] sm:$0xff]  }
  0x11   : > { %2079 = vmatpush3.bf16.msra.mxu0 %v2256_v3  ;;  %v2268_v19 = vld [vmem:[%s2678_s3 + $0x20] sm:$0xff]   ;;  %v2272_v23 = vld [vmem:[%s2679_s4 + $0x18] sm:$0xff]   ;;  %v2273_v24 = vld [vmem:[%s2679_s4 + $0x10] sm:$0xff]  }
  0x12   : > { %2087 = vmatpush3.bf16.msra.mxu1 %v2257_v4  ;;  %2092 = vmatprep.subr.bf16.mxu0 %v2304_v1  ;;  %v2271_v22 = vld [vmem:[%s2679_s4] sm:$0xff]   ;;  %v2274_v25 = vld [vmem:[%s2679_s4 + $0x28] sm:$0xff]   ;;  %v2276_v27 = vld [vmem:[%s2679_s4 + $0x38] sm:$0xff]  }
  0x13   : > { %2100 = vmatprep.subr.bf16.mxu1 %v2304_v1  ;;  %v2275_v26 = vld [vmem:[%s2679_s4 + $0x20] sm:$0xff]   ;;  %v2277_v28 = vld [vmem:[%s2679_s4 + $0x30] sm:$0xff]  }
  0x14   : > { %2081 = vmatmul.mubr.msk.bf16.vlgmr.msra.gmra.mxu0 %vm487_vm1, %v429_v8  ;;  %v1967_v45 = vld [vmem:[%s2682_s7] ss:$0 sm:$0xff]  ;;  %v1968_v46 = vld [vmem:[%s2682_s7 + $0x1] ss:$0 sm:$0xff]  ;;  %v1969_v63 = vld [vmem:[%s2682_s7 + $0x2] ss:$0 sm:$0xff] }
  0x15   : > { %2089 = vmatmul.mubr.msk.bf16.vlgmr.msra.gmra.mxu1 %vm487_vm1, %v429_v8  ;;  %2093 = vmatpush3.bf16.msra.mxu0 %v2258_v5  ;;  %v1951_v55 = vld [vmem:[%s2681_s6] ss:$0 sm:$0xff]  ;;  %v1952_v56 = vld [vmem:[%s2681_s6 + $0x1] ss:$0 sm:$0xff]  ;;  %v1970_v0 = vld [vmem:[%s2682_s7 + $0x3] ss:$0 sm:$0xff] }
  0x16   : > { %2101 = vmatpush3.bf16.msra.mxu1 %v2259_v7  ;;  %2094 = vmatprep.subr.bf16.mxu0 %v2304_v1 }
  0x17   : > { %2102 = vmatprep.subr.bf16.mxu1 %v2304_v1  ;;  %2096 = vmatprep.mubr.msk.bf16.mxu0 %vm2305_vm0, %v2304_v1 }
  0x18   : > { %2104 = vmatprep.mubr.msk.bf16.mxu1 %vm2305_vm0, %v2304_v1 }
  0x19   : > { %2095 = vmatpush3.bf16.msra.mxu0 %v2260_v9 }
  0x1a   : > { %2103 = vmatpush3.bf16.msra.mxu1 %v2261_v10  ;;  %2108 = vmatprep.subr.bf16.mxu0 %v2304_v1 }
  0x1b   : > { %2116 = vmatprep.subr.bf16.mxu1 %v2304_v1 }
  0x1c   : > { %2097 = vmatmul.mubr.msk.bf16.vlgmr.msra.gmra.mxu0 %vm487_vm1, %v429_v8 }
  0x1d   : > { %2105 = vmatmul.mubr.msk.bf16.vlgmr.msra.gmra.mxu1 %vm487_vm1, %v429_v8  ;;  %2109 = vmatpush3.bf16.msra.mxu0 %v2262_v11 }
  0x1e   : > { %2117 = vmatpush3.bf16.msra.mxu1 %v2263_v12  ;;  %2110 = vmatprep.subr.bf16.mxu0 %v2304_v1 }
  0x1f   : > { %2118 = vmatprep.subr.bf16.mxu1 %v2304_v1  ;;  %2112 = vmatprep.mubr.msk.bf16.mxu0 %vm2305_vm0, %v2304_v1 }
  0x20   : > { %2120 = vmatprep.mubr.msk.bf16.mxu1 %vm2305_vm0, %v2304_v1 }
  0x21   : > { %2111 = vmatpush3.bf16.msra.mxu0 %v2264_v14 }
  0x22   : > { %2119 = vmatpush3.bf16.msra.mxu1 %v2265_v15  ;;  %2124 = vmatprep.subr.bf16.mxu0 %v2304_v1  ;;  %v1953_v15 = vld [vmem:[%s2681_s6 + $0x2] ss:$0 sm:$0xff] }
  0x23   : > { %2132 = vmatprep.subr.bf16.mxu1 %v2304_v1 }
  0x24   : > { %2113 = vmatmul.mubr.msk.bf16.vlgmr.msra.gmra.mxu0 %vm487_vm1, %v430_v16 }
  0x25   : > { %2121 = vmatmul.mubr.msk.bf16.vlgmr.msra.gmra.mxu1 %vm487_vm1, %v430_v16  ;;  %2125 = vmatpush3.bf16.msra.mxu0 %v2266_v17 }
  0x26   : > { %2133 = vmatpush3.bf16.msra.mxu1 %v2267_v18  ;;  %2126 = vmatprep.subr.bf16.mxu0 %v2304_v1 }
  0x27   : > { %2134 = vmatprep.subr.bf16.mxu1 %v2304_v1  ;;  %2128 = vmatprep.mubr.msk.bf16.mxu0 %vm2305_vm0, %v2304_v1 }
  0x28   : > { %2136 = vmatprep.mubr.msk.bf16.mxu1 %vm2305_vm0, %v2304_v1 }
  0x29   : > { %2127 = vmatpush3.bf16.msra.mxu0 %v2268_v19 }
  0x2a   : > { %2135 = vmatpush3.bf16.msra.mxu1 %v2269_v20  ;;  %2140 = vmatprep.subr.bf16.mxu0 %v2304_v1 }
  0x2b   : > { %2148 = vmatprep.subr.bf16.mxu1 %v2304_v1 }
  0x2c   : > { %2129 = vmatmul.mubr.msk.bf16.vlgmr.msra.gmra.mxu0 %vm487_vm1, %v430_v16 }
  0x2d   : > { %2137 = vmatmul.mubr.msk.bf16.vlgmr.msra.gmra.mxu1 %vm487_vm1, %v430_v16  ;;  %2144 = vmatprep.mubr.msk.bf16.mxu0 %vm2305_vm0, %v2304_v1 }
  0x2e   : > { %2152 = vmatprep.mubr.msk.bf16.mxu1 %vm2305_vm0, %v2304_v1  ;;  %2141 = vmatpush3.bf16.msra.mxu0 %v2270_v21 }
  0x2f   : > { %2142 = vmatprep.subr.bf16.mxu0 %v2304_v1  ;;  %2149 = vmatpush3.bf16.msra.mxu1 %v2272_v23 }
  0x30   : > { %2150 = vmatprep.subr.bf16.mxu1 %v2304_v1 }
  0x32   : > { %2143 = vmatpush3.bf16.msra.mxu0 %v2271_v22 }
  0x33   : > { %2156 = vmatprep.subr.bf16.mxu0 %v2304_v1  ;;  %2151 = vmatpush3.bf16.msra.mxu1 %v2273_v24 }
  0x34   : > { %2164 = vmatprep.subr.bf16.mxu1 %v2304_v1 }
  0x35   : > { %2145 = vmatmul.mubr.msk.bf16.vlgmr.msra.gmra.mxu0 %vm487_vm1, %v430_v16 }
  0x36   : > { %2157 = vmatpush3.bf16.msra.mxu0 %v2274_v25  ;;  %2160 = vmatprep.mubr.msk.bf16.mxu0 %vm2305_vm0, %v2304_v1 }
  0x37   : > { %2158 = vmatprep.subr.bf16.mxu0 %v2304_v1  ;;  %2153 = vmatmul.mubr.msk.bf16.vlgmr.msra.gmra.mxu1 %vm487_vm1, %v430_v16 }
  0x38   : > { %2165 = vmatpush3.bf16.msra.mxu1 %v2276_v27  ;;  %2168 = vmatprep.mubr.msk.bf16.mxu1 %vm2305_vm0, %v2304_v1  ;;  %v1983_v27 = vld [vmem:[%s2683_s8] ss:$0 sm:$0xff] }
  0x39   : > { %2166 = vmatprep.subr.bf16.mxu1 %v2304_v1 }
  0x3a   : > { %2159 = vmatpush3.bf16.msra.mxu0 %v2275_v26 }
  0x3b   : > { %2172 = vmatprep.subr.bf16.mxu0 %v2304_v1 }
  0x3c   : > { %2167 = vmatpush3.bf16.msra.mxu1 %v2277_v28 }
  0x3d   : > { %2161 = vmatmul.mubr.msk.bf16.vlgmr.msra.gmra.mxu0 %vm487_vm1, %v430_v16  ;;  %2178 = vmatprep.subr.bf16.mxu1 %v2304_v1 }
  0x3e   : > { %2174 = vmatprep.mubr.msk.bf16.mxu0 %vm2305_vm0, %v2304_v1 }
  0x3f   : > { %2169 = vmatmul.mubr.msk.bf16.vlgmr.msra.gmra.mxu1 %vm487_vm1, %v430_v16  ;;  %v1954_v16 = vld [vmem:[%s2681_s6 + $0x3] ss:$0 sm:$0xff] }
  0x40   : > { %2180 = vmatprep.mubr.msk.bf16.mxu1 %vm2305_vm0, %v2304_v1 }
  0xd4   : > { %v525_v29 = vpop.f32.mrf.mxu0 }
  0xd5   : > { %v577_v30 = vpop.f32.mrf.mxu1  ;;  %v526_v2 = vadd.f32 %v1951_v55, %v525_v29 }
  0xd6   : > { %v2082_v31 = vpop.f32.mrf.mxu0  ;;  %v578_v3 = vadd.f32 %v1952_v56, %v577_v30 }
  0xd7   : > { %v2090_v32 = vpop.f32.mrf.mxu1  ;;  %v1194_v11 = vpack.c.bf16 %v526_v2, %v526_v2  ;;  %v1984_v31 = vld [vmem:[%s2683_s8 + $0x1] ss:$0 sm:$0xff] }
  0xd8   : > { %v528_v33 = vpop.f32.mrf.mxu0  ;;  %v1195_v12 = vpack.c.bf16 %v578_v3, %v578_v3 }
  0xd9   : > { %v580_v34 = vpop.f32.mrf.mxu1 }
  0xda   : > { %v2083_v35 = vpop.f32.mrf.mxu0 }
  0xdb   : > { %v2091_v36 = vpop.f32.mrf.mxu1 }
  0xdc   : > { %v629_v37 = vpop.f32.mrf.mxu0 }
  0xdd   : > { %v681_v38 = vpop.f32.mrf.mxu1  ;;  %v630_v23 = vadd.f32 %v1953_v15, %v629_v37 }
  0xde   : > { %v2098_v39 = vpop.f32.mrf.mxu0  ;;  %v682_v24 = vadd.f32 %v1954_v16, %v681_v38 }
  0xdf   : > { %v2106_v40 = vpop.f32.mrf.mxu1  ;;  %v1196_v25 = vpack.c.bf16 %v630_v23, %v630_v23 }
  0xe0   : > { %v632_v41 = vpop.f32.mrf.mxu0  ;;  %v1197_v26 = vpack.c.bf16 %v682_v24, %v682_v24 }
  0xe1   : > { %v684_v42 = vpop.f32.mrf.mxu1 }
  0xe2   : > { %v2099_v43 = vpop.f32.mrf.mxu0 }
  0xe3   : > { %v2107_v44 = vpop.f32.mrf.mxu1 }
  0xe4   : > { %v780_v47 = vpop.f32.mrf.mxu0 }
  0xe5   : > { %v832_v48 = vpop.f32.mrf.mxu1  ;;  %v781_v49 = vadd.f32 %v1967_v45, %v780_v47 }
  0xe6   : > { %v833_v50 = vadd.f32 %v1968_v46, %v832_v48  ;;  %v2114_v51 = vpop.f32.mrf.mxu0 }
  0xe7   : > { %v2122_v52 = vpop.f32.mrf.mxu1  ;;  %v1198_v53 = vpack.c.bf16 %v781_v49, %v781_v49  ;;  %v1391_v51 = vlaneseq }
  0xe8   : > { %v1199_v54 = vpack.c.bf16 %v833_v50, %v833_v50  ;;  %v783_v57 = vpop.f32.mrf.mxu0 }
  0xe9   : > { %v835_v58 = vpop.f32.mrf.mxu1  ;;  %v1207_v59 = vsel %vm1202_vm2, %v1198_v53, 0  ;;  %v1392_v52 = vshrl.u32 %v1391_v51, 7  ;;  %v1394_v53 = vand.u32 127, %v1391_v51 }
  0xea   : > { %v1253_v60 = vsel %vm1202_vm2, %v1199_v54, 0  ;;  %v2115_v61 = vpop.f32.mrf.mxu0  ;;  %2173 = vmatpush3.bf16.xpose.msra.mxu0 %v1207_v59 }
  0xeb   : > { %v2123_v62 = vpop.f32.mrf.mxu1  ;;  %2179 = vmatpush3.bf16.xpose.msra.mxu1 %v1253_v60  ;;  %2184 = vmatprep.subr.bf16.mxu0 %v2304_v1  ;;  %vm1395_vm4 = vcmp.le.s32.totalorder %v1394_v53, %v1392_v52 }
  0xec   : > { %2190 = vmatprep.subr.bf16.mxu1 %v2304_v1  ;;  %v884_v4 = vpop.f32.mrf.mxu0 }
  0xed   : > { %v936_v5 = vpop.f32.mrf.mxu1  ;;  %v885_v7 = vadd.f32 %v1969_v63, %v884_v4 }
  0xee   : > { %v937_v8 = vadd.f32 %v1970_v0, %v936_v5  ;;  %v2130_v9 = vpop.f32.mrf.mxu0 }
  0xef   : > { %v2138_v10 = vpop.f32.mrf.mxu1  ;;  %v1200_v13 = vpack.c.bf16 %v885_v7, %v885_v7 }
  0xf0   : > { %v1201_v14 = vpack.c.bf16 %v937_v8, %v937_v8  ;;  %v887_v17 = vpop.f32.mrf.mxu0 }
  0xf1   : > { %v939_v18 = vpop.f32.mrf.mxu1  ;;  %v1299_v19 = vsel %vm1202_vm2, %v1200_v13, 0  ;;  %2175 = vmatmul.mubr.msk.bf16.vlgmr.msra.gmra.mxu0 %vm1202_vm2, %v1194_v11 }
  0xf2   : > { %v1345_v20 = vsel %vm1202_vm2, %v1201_v14, 0  ;;  %2181 = vmatmul.mubr.msk.bf16.vlgmr.msra.gmra.mxu1 %vm1202_vm2, %v1195_v12  ;;  %v2131_v21 = vpop.f32.mrf.mxu0  ;;  %2185 = vmatpush3.bf16.xpose.msra.mxu0 %v1299_v19 }
  0xf3   : > { %v2139_v22 = vpop.f32.mrf.mxu1  ;;  %2191 = vmatpush3.bf16.xpose.msra.mxu1 %v1345_v20  ;;  %2186 = vmatprep.mubr.msk.bf16.mxu0 %vm2305_vm0, %v2304_v1 }
  0xf4   : > { %2192 = vmatprep.mubr.msk.bf16.mxu1 %vm2305_vm0, %v2304_v1  ;;  %2196 = vmatprep.subr.bf16.mxu0 %v2304_v1 }
  0xf5   : > { %2202 = vmatprep.subr.bf16.mxu1 %v2304_v1  ;;  %v1032_v28 = vpop.f32.mrf.mxu0 }
  0xf6   : > { %v1033_v29 = vadd.f32 %v1983_v27, %v1032_v28 }
  0xf7   : > { %v2146_v30 = vpop.f32.mrf.mxu0  ;;  %v1084_v34 = vpop.f32.mrf.mxu1 }
  0xf8   : > { %v1450_v32 = vpack.c.bf16 %v1033_v29, %v1033_v29  ;;  %v1085_v36 = vadd.f32 %v1984_v31, %v1084_v34 }
  0xf9   : > { %2187 = vmatmul.mubr.msk.bf16.vlgmr.msra.gmra.mxu0 %vm1202_vm2, %v1196_v25  ;;  %v1035_v33 = vpop.f32.mrf.mxu0  ;;  %v2154_v38 = vpop.f32.mrf.mxu1 }
  0xfa   : > { %2193 = vmatmul.mubr.msk.bf16.vlgmr.msra.gmra.mxu1 %vm1202_vm2, %v1197_v26  ;;  %2198 = vmatprep.mubr.msk.bf16.mxu0 %vm2305_vm0, %v2304_v1  ;;  %v1459_v35 = vsel %vm1457_vm3, %v1450_v32, 0  ;;  %v1451_v39 = vpack.c.bf16 %v1085_v36, %v1085_v36 }
  0xfb   : > { %2204 = vmatprep.mubr.msk.bf16.mxu1 %vm2305_vm0, %v2304_v1  ;;  %v2147_v37 = vpop.f32.mrf.mxu0  ;;  %2197 = vmatpush3.bf16.msra.mxu0 %v1459_v35  ;;  %v1087_v40 = vpop.f32.mrf.mxu1 }
  0xfc   : > { %2208 = vmatprep.subr.bf16.mxu0 %v2304_v1  ;;  %v1505_v42 = vsel %vm1457_vm3, %v1451_v39, 0 }
  0xfd   : > { %v2583_v41 = vpop.f32.mrf.mxu0  ;;  %v2155_v43 = vpop.f32.mrf.mxu1  ;;  %2203 = vmatpush3.bf16.msra.mxu1 %v1505_v42 }
  0xfe   : > { %2214 = vmatprep.subr.bf16.mxu1 %v2304_v1  ;;  %v1985_v43 = vld [vmem:[%s2683_s8 + $0x2] ss:$0 sm:$0xff] }
  0xff   : > { %v2162_v44 = vpop.f32.mrf.mxu0  ;;  %v2587_v46 = vpop.f32.mrf.mxu1 }
 0x101   : > { %v1139_v45 = vpop.f32.mrf.mxu0  ;;  %v2170_v48 = vpop.f32.mrf.mxu1 }
 0x102   : > { %v1137_v45 = vadd.f32 %v1985_v43, %v2583_v41 }
 0x103   : > { %v2163_v47 = vpop.f32.mrf.mxu0  ;;  %v1191_v49 = vpop.f32.mrf.mxu1 }
 0x104   : > { %v1986_v47 = vld [vmem:[%s2683_s8 + $0x3] ss:$0 sm:$0xff] }
 0x105   : > { %v2171_v50 = vpop.f32.mrf.mxu1  ;;  %v1189_v51 = vadd.f32 %v1986_v47, %v2587_v46  ;;  %v1643_v46 = vld [vmem:[%s2680_s5] sm:$0xf] }
 0x106   : > { %v1452_v50 = vpack.c.bf16 %v1137_v45, %v1137_v45 }
 0x1b1   : > { %v1243_v54 = vpop.f32.mrf.mxu0 }
 0x1b2   : > { %v1289_v55 = vpop.f32.mrf.mxu1  ;;  %v1387_v56 = vmul.f32 0.35355338, %v1243_v54 }
 0x1b3   : > { %v1388_v57 = vmul.f32 0.35355338, %v1289_v55  ;;  %v2176_v58 = vpop.f32.mrf.mxu0  ;;  %v1551_v55 = vsel %vm1457_vm3, %v1452_v50, 0 }
 0x1b4   : > { %v2182_v59 = vpop.f32.mrf.mxu1  ;;  %v1398_v60 = vsel %vm1395_vm4, %v1387_v56, -1e+30  ;;  %v1453_v56 = vpack.c.bf16 %v1189_v51, %v1189_v51 }
 0x1b5   : > { %v1246_v61 = vpop.f32.mrf.mxu0  ;;  %v1402_v63 = vsel %vm1202_vm2, %v1398_v60, -inf  ;;  %v1399_v0 = vsel %vm1395_vm4, %v1388_v57, -1e+30 }
 0x1b6   : > { %v1292_v62 = vpop.f32.mrf.mxu1  ;;  %1403 = vmax.xlane.f32.xlu0 %v1402_v63  ;;  %v1405_v7 = vsel %vm1202_vm2, %v1399_v0, -inf  ;;  %v1597_v59 = vsel %vm1457_vm3, %v1453_v56, 0 }
 0x1b7   : > { %v2177_v2 = vpop.f32.mrf.mxu0  ;;  %v1651_v62 = vsel %vm1457_vm3, %v1643_v46, 0 }
 0x1b8   : > { %v2183_v3 = vpop.f32.mrf.mxu1 }
 0x1b9   : > { %v1335_v4 = vpop.f32.mrf.mxu0  ;;  %v1644_v3 = vld [vmem:[%s2680_s5 + $0x4] sm:$0xf] }
 0x1ba   : > { %v1381_v5 = vpop.f32.mrf.mxu1  ;;  %v1389_v8 = vmul.f32 0.35355338, %v1335_v4  ;;  %1406 = vmax.xlane.f32.xlu0 %v1405_v7  ;;  %v1697_v4 = vsel %vm1457_vm3, %v1644_v3, 0  ;;  %v2013_v3 = vld [vmem:[%s2686_s11] ss:$0 sm:$0xff] }
 0x1bb   : > { %v1390_v9 = vmul.f32 0.35355338, %v1381_v5  ;;  %v2188_v10 = vpop.f32.mrf.mxu0  ;;  %v1645_v5 = vld [vmem:[%s2680_s5 + $0x8] sm:$0xf] }
 0x1bc   : > { %v2194_v11 = vpop.f32.mrf.mxu1  ;;  %v1400_v12 = vsel %vm1395_vm4, %v1389_v8, -1e+30 }
 0x1bd   : > { %v1338_v13 = vpop.f32.mrf.mxu0  ;;  %v1408_v15 = vsel %vm1202_vm2, %v1400_v12, -inf  ;;  %v1401_v16 = vsel %vm1395_vm4, %v1390_v9, -1e+30  ;;  %v1743_v9 = vsel %vm1457_vm3, %v1645_v5, 0  ;;  %v1646_v11 = vld [vmem:[%s2680_s5 + $0xc] sm:$0xf] }
 0x1be   : > { %v1384_v14 = vpop.f32.mrf.mxu1  ;;  %1409 = vmax.xlane.f32.xlu1 %v1408_v15  ;;  %v1411_v19 = vsel %vm1202_vm2, %v1401_v16, -inf  ;;  %v1789_v15 = vsel %vm1457_vm3, %v1646_v11, 0 }
 0x1bf   : > { %v2189_v17 = vpop.f32.mrf.mxu0 }
 0x1c0   : > { %v2195_v18 = vpop.f32.mrf.mxu1 }
 0x1c2   : > { %1412 = vmax.xlane.f32.xlu1 %v1411_v19 }
 0x23f   : > { %v1404_v20 = vpop.xlane.xlu0 %1403 }
 0x240   : > { %v1414_v21 = vsub.f32 %v1398_v60, %v1404_v20 }
 0x242   : > { %v1418_v22 = vmul.f32 1.442695, %v1414_v21 }
 0x243   : > { %v1407_v23 = vpop.xlane.xlu0 %1406 }
 0x244   : > { %2278 = vpow2.f32 %v1418_v22  ;;  %v1415_v24 = vsub.f32 %v1399_v0, %v1407_v23 }
 0x246   : > { %v1420_v25 = vmul.f32 1.442695, %v1415_v24 }
 0x247   : > { %v1410_v26 = vpop.xlane.xlu1 %1409 }
 0x248   : > { %2280 = vpow2.f32 %v1420_v25  ;;  %v1416_v27 = vsub.f32 %v1400_v12, %v1410_v26 }
 0x24a   : > { %v1422_v28 = vmul.f32 1.442695, %v1416_v27 }
 0x24b   : > { %v1413_v29 = vpop.xlane.xlu1 %1412 }
 0x24c   : > { %2282 = vpow2.f32 %v1422_v28  ;;  %v1417_v30 = vsub.f32 %v1401_v16, %v1413_v29 }
 0x24e   : > { %v1424_v31 = vmul.f32 1.442695, %v1417_v30 }
 0x250   : > { %2284 = vpow2.f32 %v1424_v31 }
 0x251   : > { %v2279_v32 = vpop.eup %2278 }
 0x252   : > { %v1426_v33 = vsel %vm1202_vm2, %v2279_v32, 0.0 }
 0x253   : > { %1427 = vadd.xlane.f32.xlu0 %v1426_v33 }
 0x255   : > { %v2281_v34 = vpop.eup %2280 }
 0x256   : > { %v1429_v35 = vsel %vm1202_vm2, %v2281_v34, 0.0 }
 0x257   : > { %1430 = vadd.xlane.f32.xlu1 %v1429_v35 }
 0x259   : > { %v2283_v36 = vpop.eup %2282 }
 0x25a   : > { %v1432_v37 = vsel %vm1202_vm2, %v2283_v36, 0.0 }
 0x25b   : > { %1433 = vadd.xlane.f32.xlu0 %v1432_v37 }
 0x25d   : > { %v2285_v38 = vpop.eup %2284 }
 0x25e   : > { %v1435_v39 = vsel %vm1202_vm2, %v2285_v38, 0.0 }
 0x25f   : > { %1436 = vadd.xlane.f32.xlu1 %v1435_v39 }
 0x2dc   : > { %v1428_v40 = vpop.xlane.xlu0 %1427 }
 0x2dd   : > { %2286 = vrcp.f32 %v1428_v40 }
 0x2e0   : > { %v1431_v42 = vpop.xlane.xlu1 %1430 }
 0x2e1   : > { %2288 = vrcp.f32 %v1431_v42 }
 0x2e4   : > { %v1434_v44 = vpop.xlane.xlu0 %1433 }
 0x2e5   : > { %2290 = vrcp.f32 %v1434_v44 }
 0x2e8   : > { %v1437_v48 = vpop.xlane.xlu1 %1436 }
 0x2e9   : > { %2292 = vrcp.f32 %v1437_v48 }
 0x2ea   : > { %v2287_v49 = vpop.eup %2286 }
 0x2eb   : > { %v1439_v52 = vmul.f32 %v2287_v49, %v2279_v32  ;;  %v2011_v49 = vld [vmem:[%s2684_s9] ss:$0 sm:$0xff] }
 0x2ed   : > { %v1446_v53 = vpack.c.bf16 %v1439_v52, %v1439_v52 }
 0x2ee   : > { %v2289_v54 = vpop.eup %2288 }
 0x2ef   : > { %2199 = vmatmul.mubr.msk.bf16.vlgmr.msra.gmra.mxu0 %vm1202_vm2, %v1446_v53  ;;  %v1441_v57 = vmul.f32 %v2289_v54, %v2281_v34 }
 0x2f0   : > { %2209 = vmatpush3.bf16.msra.mxu0 %v1551_v55  ;;  %2210 = vmatprep.mubr.msk.bf16.mxu0 %vm2305_vm0, %v2304_v1 }
 0x2f1   : > { %v1447_v41 = vpack.c.bf16 %v1441_v57, %v1441_v57  ;;  %2220 = vmatprep.subr.bf16.mxu0 %v2304_v1 }
 0x2f2   : > { %v2291_v58 = vpop.eup %2290 }
 0x2f3   : > { %2205 = vmatmul.mubr.msk.bf16.vlgmr.msra.gmra.mxu1 %vm1202_vm2, %v1447_v41  ;;  %v1443_v60 = vmul.f32 %v2291_v58, %v2283_v36 }
 0x2f4   : > { %2215 = vmatpush3.bf16.msra.mxu1 %v1597_v59  ;;  %2216 = vmatprep.mubr.msk.bf16.mxu1 %vm2305_vm0, %v2304_v1 }
 0x2f5   : > { %v1448_v61 = vpack.c.bf16 %v1443_v60, %v1443_v60  ;;  %2226 = vmatprep.subr.bf16.mxu1 %v2304_v1 }
 0x2f6   : > { %v2293_v63 = vpop.eup %2292 }
 0x2f7   : > { %2211 = vmatmul.mubr.msk.bf16.vlgmr.msra.gmra.mxu0 %vm1202_vm2, %v1448_v61  ;;  %v1445_v0 = vmul.f32 %v2293_v63, %v2285_v38 }
 0x2f8   : > { %2221 = vmatpush3.bf16.msra.mxu0 %v1651_v62  ;;  %2222 = vmatprep.mubr.msk.bf16.mxu0 %vm2305_vm0, %v2304_v1 }
 0x2f9   : > { %v1449_v2 = vpack.c.bf16 %v1445_v0, %v1445_v0  ;;  %2232 = vmatprep.subr.bf16.mxu0 %v2304_v1 }
 0x2fb   : > { %2217 = vmatmul.mubr.msk.bf16.vlgmr.msra.gmra.mxu1 %vm1202_vm2, %v1449_v2 }
 0x2fc   : > { %2228 = vmatprep.mubr.msk.bf16.mxu1 %vm2305_vm0, %v2304_v1  ;;  %2227 = vmatpush3.bf16.msra.mxu1 %v1697_v4 }
 0x2fd   : > { %2238 = vmatprep.subr.bf16.mxu1 %v2304_v1 }
 0x3af   : > { %v1495_v7 = vpop.f32.mrf.mxu0 }
 0x3b0   : > { %v1639_v8 = vpack.c.bf16 %v1495_v7, %v1495_v7 }
 0x3b1   : > { %v2200_v10 = vpop.f32.mrf.mxu0 }
 0x3b2   : > { %2223 = vmatmul.mubr.msk.bf16.vlgmr.msra.gmra.mxu0 %vm1202_vm2, %v1639_v8 }
 0x3b3   : > { %v1498_v12 = vpop.f32.mrf.mxu0  ;;  %v1541_v13 = vpop.f32.mrf.mxu1  ;;  %2233 = vmatpush3.bf16.msra.mxu0 %v1743_v9  ;;  %2234 = vmatprep.mubr.msk.bf16.mxu0 %vm2305_vm0, %v2304_v1 }
 0x3b4   : > { %v1640_v14 = vpack.c.bf16 %v1541_v13, %v1541_v13 }
 0x3b5   : > { %v2201_v16 = vpop.f32.mrf.mxu0  ;;  %v2206_v17 = vpop.f32.mrf.mxu1 }
 0x3b6   : > { %2229 = vmatmul.mubr.msk.bf16.vlgmr.msra.gmra.mxu1 %vm1202_vm2, %v1640_v14 }
 0x3b7   : > { %v1544_v18 = vpop.f32.mrf.mxu1  ;;  %v1587_v19 = vpop.f32.mrf.mxu0  ;;  %2239 = vmatpush3.bf16.msra.mxu1 %v1789_v15  ;;  %2240 = vmatprep.mubr.msk.bf16.mxu1 %vm2305_vm0, %v2304_v1 }
 0x3b8   : > { %v1641_v20 = vpack.c.bf16 %v1587_v19, %v1587_v19 }
 0x3b9   : > { %v2207_v21 = vpop.f32.mrf.mxu1  ;;  %v2212_v22 = vpop.f32.mrf.mxu0 }
 0x3ba   : > { %2235 = vmatmul.mubr.msk.bf16.vlgmr.msra.gmra.mxu0 %vm1202_vm2, %v1641_v20 }
 0x3bb   : > { %v1590_v23 = vpop.f32.mrf.mxu0  ;;  %v1633_v24 = vpop.f32.mrf.mxu1 }
 0x3bc   : > { %v1642_v25 = vpack.c.bf16 %v1633_v24, %v1633_v24 }
 0x3bd   : > { %v2213_v26 = vpop.f32.mrf.mxu0  ;;  %v2218_v27 = vpop.f32.mrf.mxu1 }
 0x3be   : > { %2241 = vmatmul.mubr.msk.bf16.vlgmr.msra.gmra.mxu1 %vm1202_vm2, %v1642_v25 }
 0x3bf   : > { %v1636_v28 = vpop.f32.mrf.mxu1 }
 0x3c1   : > { %v2219_v29 = vpop.f32.mrf.mxu1 }
 0x472   : > { %v1687_v30 = vpop.f32.mrf.mxu0 }
 0x473   : > { %v1831_v38 = vsel %vm487_vm1, %v1687_v30, 0.0 }
 0x474   : > { %v2224_v31 = vpop.f32.mrf.mxu0 }
 0x476   : > { %v1690_v32 = vpop.f32.mrf.mxu0  ;;  %v1733_v33 = vpop.f32.mrf.mxu1 }
 0x477   : > { %v1832_v35 = vsel %vm487_vm1, %v1733_v33, 0.0 }
 0x478   : > { %v2225_v34 = vpop.f32.mrf.mxu0  ;;  %v2230_v1 = vpop.f32.mrf.mxu1  ;;  %v1833_v40 = vadd.f32 %v1832_v35, %v1831_v38 }
 0x47a   : > { %v1736_v36 = vpop.f32.mrf.mxu1  ;;  %v1779_v37 = vpop.f32.mrf.mxu0 }
 0x47b   : > { %v1834_v39 = vsel %vm487_vm1, %v1779_v37, 0.0 }
 0x47c   : > { %v2231_v42 = vpop.f32.mrf.mxu1  ;;  %v2236_v43 = vpop.f32.mrf.mxu0  ;;  %v1835_v44 = vadd.f32 %v1834_v39, %v1833_v40 }
 0x47e   : > { %v1782_v45 = vpop.f32.mrf.mxu0  ;;  %v1825_v47 = vpop.f32.mrf.mxu1 }
 0x47f   : > { %v1836_v48 = vsel %vm487_vm1, %v1825_v47, 0.0 }
 0x480   : > { %v1837_v50 = vadd.f32 %v1836_v48, %v1835_v44  ;;  %v2237_v51 = vpop.f32.mrf.mxu0  ;;  %v2242_v52 = vpop.f32.mrf.mxu1 }
 0x482   : > { %v1845_v53 = vadd.f32 %v2011_v49, %v1837_v50  ;;  %v1828_v54 = vpop.f32.mrf.mxu1 }
 0x484   : > { %v2243_v55 = vpop.f32.mrf.mxu1  ;;  %v1846_v56 = vadd.f32 %v1845_v53, %v2409_v6  ;;  %v2012_v6 = vld [vmem:[%s2685_s10] ss:$0 sm:$0xff] }
 0x486   : > { %v1847_v57 = vsel %vm487_vm1, %v1846_v56, 0.0 }
 0x487   : > { %1848 = vadd.xlane.f32.xlu0 %v1847_v57 }
 0x510   : > { %v1849_v41 = vpop.xlane.xlu0 %1848 }
 0x511   : > { %v1851_v58 = vmul.f32 0.03125, %v1849_v41 }
 0x513   : > { %v1852_v46 = vsub.f32 %v1846_v56, %v1851_v58 }
 0x515   : > { %v1853_v59 = vmul.f32 %v1852_v46, %v1852_v46 }
 0x517   : > { %v1854_v60 = vsel %vm487_vm1, %v1853_v59, 0.0 }
 0x518   : > { %1855 = vadd.xlane.f32.xlu1 %v1854_v60 }
 0x5a1   : > { %v1856_v61 = vpop.xlane.xlu1 %1855 }
 0x5a2   : > { %v1857_v62 = vmul.f32 0.03125, %v1856_v61 }
 0x5a4   : > { %v1858_v63 = vadd.f32 1e-05, %v1857_v62 }
 0x5a6   : > { %2294 = vrsqrt.f32 %v1858_v63 }
 0x5b3   : > { %v2295_v0 = vpop.eup %2294 }
 0x5b4   : > { %v1860_v2 = vmul.f32 %v2295_v0, %v1852_v46 }
 0x5b6   : > { %v1868_v4 = vmul.f32 %v2012_v6, %v1860_v2 }
 0x5b8   : > { %v1876_v5 = vadd.f32 %v2013_v3, %v1868_v4 }
 0x5ba   : > { %1877 = vst.msk [vmem:[%s425_s20] sm:$0xff] %vm487_vm1, %v1876_v5 }
 0x5bb PF: > { %s22_s21 = sadd.s32 1, %s2302_s21  }
 0x5bc   : > { %p19_p4 = scmp.ge.s32.totalorder %s22_s21, 4  }
 0x5be   :  { %21 = sbr.rel (!%p19_p4) target bundleno = 1 (0x1), region = 101 }

</bundles_post_ra>
